<compile_context>
chip_gen: v5e
topology: v5e:2x2
jax: 0.10.0
libtpu: 0.0.40
codegen_flags: <defaults>
</compile_context>

<pallas_src>
import jax
import jax.numpy as jnp
from jax.experimental import pallas as pl
from jax.experimental.pallas import tpu as pltpu

# Conservative defaults: 4 MiB per-array blocks -> (in + out) double-buffered
# ~= 16 MiB, well under the 32 MiB scoped-VMEM limit and v7x's 64 MiB physical.
_TARGET_BLOCK_BYTES = 4 * 1024 * 1024
_VMEM_LIMIT_BYTES = 32 * 1024 * 1024
_LANE_TILE_BYTES = 8 * 1024          # ~8 KiB per row -> 2048 f32 / 4096 bf16 lanes
_BYPASS_BYTES = 1 * 1024 * 1024      # below this, let XLA fuse the add (faster)

# Optional bump on chips with 128 MiB VMEM per TensorCore (v5e / v6e).
try:  # pure perf knob; fall back to the conservative defaults on any failure
    _vmem_cap = getattr(pltpu.get_tpu_info(), "vmem_capacity_bytes", 0) or 0
    if _vmem_cap >= 100 * 1024 * 1024:
        _TARGET_BLOCK_BYTES = 8 * 1024 * 1024
        _VMEM_LIMIT_BYTES = 64 * 1024 * 1024
except Exception:
    pass


def _bias_add_kernel(x_ref, b_ref, o_ref):
    # Pure VPU broadcast-add. b is either (1, tl) (per-lane bias, 2-D path) or
    # (tn, 1) (per-row bias, flattened NCHW path); jnp broadcasting handles both.
    o_ref[...] = (x_ref[...] + b_ref[...]).astype(o_ref.dtype)


def _choose_tiles(n_rows, n_lanes, in_itemsize, out_itemsize):
    """Dtype-aware tiles: lane tile multiple of 128 (or full), row tile multiple
    of 8 (or full), sized so a block carries ~_TARGET_BLOCK_BYTES."""
    item = max(in_itemsize, out_itemsize)
    lane_cap = max(128, (_LANE_TILE_BYTES // item) // 128 * 128)
    tl = n_lanes if n_lanes <= lane_cap else lane_cap
    row_cap = max(8, (_TARGET_BLOCK_BYTES // (tl * item)) // 8 * 8)
    tn = n_rows if n_rows <= row_cap else row_cap
    return tn, tl


def _add_lane_bias_2d(x, b_row, out_dtype):
    """x: (N, C); b_row: (1, C) in out_dtype.  out[n, c] = x[n, c] + b_row[0, c]."""
    n, c = x.shape
    tn, tl = _choose_tiles(n, c, x.dtype.itemsize, jnp.dtype(out_dtype).itemsize)
    # Lane-tile axis OUTER so the (1, tl) bias block stays resident across the
    # inner row-tile loop.
    grid = (pl.cdiv(c, tl), pl.cdiv(n, tn))
    return pl.pallas_call(
        _bias_add_kernel,
        out_shape=jax.ShapeDtypeStruct((n, c), out_dtype),
        grid_spec=pltpu.PrefetchScalarGridSpec(
            num_scalar_prefetch=0,
            grid=grid,
            in_specs=[
                pl.BlockSpec((tn, tl), lambda j, i: (i, j)),
                pl.BlockSpec((1, tl), lambda j, i: (0, j)),
            ],
            out_specs=pl.BlockSpec((tn, tl), lambda j, i: (i, j)),
        ),
        compiler_params=pltpu.CompilerParams(
            dimension_semantics=("parallel", "parallel"),
            vmem_limit_bytes=_VMEM_LIMIT_BYTES,
        ),
    )(x, b_row)


def _add_row_bias_2d(x, b_col, out_dtype):
    """x: (R, L); b_col: (R, 1) in out_dtype.  out[r, l] = x[r, l] + b_col[r, 0]."""
    r, l = x.shape
    tn, tl = _choose_tiles(r, l, x.dtype.itemsize, jnp.dtype(out_dtype).itemsize)
    # Row-tile axis OUTER so the (tn, 1) bias block stays resident across the
    # inner lane-tile loop.
    grid = (pl.cdiv(r, tn), pl.cdiv(l, tl))
    return pl.pallas_call(
        _bias_add_kernel,
        out_shape=jax.ShapeDtypeStruct((r, l), out_dtype),
        grid_spec=pltpu.PrefetchScalarGridSpec(
            num_scalar_prefetch=0,
            grid=grid,
            in_specs=[
                pl.BlockSpec((tn, tl), lambda i, j: (i, j)),
                pl.BlockSpec((tn, 1), lambda i, j: (i, 0)),
            ],
            out_specs=pl.BlockSpec((tn, tl), lambda i, j: (i, j)),
        ),
        compiler_params=pltpu.CompilerParams(
            dimension_semantics=("parallel", "parallel"),
            vmem_limit_bytes=_VMEM_LIMIT_BYTES,
        ),
    )(x, b_col)


class AddBias:
    """JAX/Pallas port of AddBias. Parameter stored as (C, 1) like the nn.Module."""

    def __init__(self, bias_vec):
        # mirrors nn.Parameter(bias.unsqueeze(1))
        self._bias = jnp.asarray(bias_vec).reshape(-1, 1)

    def __call__(self, x):
        c = self._bias.shape[0]
        # Match PyTorch type promotion (e.g. bf16 activations + f32 param -> f32).
        out_dtype = jnp.result_type(x.dtype, self._bias.dtype)
        out_item = jnp.dtype(out_dtype).itemsize
        b = self._bias.astype(out_dtype)

        if x.ndim == 2:
            assert x.shape[1] == c, "feature dim of x must match bias length"
            # Tiny RL-logits case: pallas_call overhead dwarfs the work.
            if x.shape[1] < 128 or x.size * out_item < _BYPASS_BYTES:
                return x + b.T.reshape(1, c)
            return _add_lane_bias_2d(x, b.T.reshape(1, c), out_dtype)

        # NCHW conv activations.
        assert x.ndim == 4 and x.shape[1] == c, "expected NCHW with C == bias length"
        n, _, h, w = x.shape
        hw = h * w
        # Small conv maps: XLA's fused add is strictly faster than the kernel.
        if hw < 128 or x.size * out_item < _BYPASS_BYTES:
            return x + b.reshape(1, c, 1, 1)
        # Flatten to (N*C, H*W): sublanes fully packed even when C is small; the
        # per-row bias is just the (C, 1) parameter broadcast over the batch
        # (N*C scalars, negligible to materialize).
        x2 = x.reshape(n * c, hw)
        b_rows = jnp.broadcast_to(b[None, :, :], (n, c, 1)).reshape(n * c, 1)
        out2 = _add_row_bias_2d(x2, b_rows, out_dtype)
        return out2.reshape(n, c, h, w)


if __name__ == "__main__":
    key = jax.random.PRNGKey(0)
    k_bias, k_x4s, k_x4l, k_x2s, k_x2l, k_bias_big, k_bias2 = jax.random.split(key, 7)

    # --- small NCHW, matches the module's typical RL usage (bypass path) ---
    C = 4
    bias_vec = jax.random.normal(k_bias, (C,), dtype=jnp.float32)
    module = AddBias(bias_vec)
    x4s = jax.random.normal(k_x4s, (2, C, 16, 16), dtype=jnp.float32)
    y4s = jax.block_until_ready(module(x4s))
    assert y4s.shape == x4s.shape and y4s.dtype == x4s.dtype
    assert jnp.allclose(y4s, x4s + bias_vec.reshape(1, C, 1, 1), atol=1e-6, rtol=1e-6)

    # --- larger NCHW: exercises the flattened (N*C, H*W) Pallas kernel ---
    C_BIG = 64
    bias_big = jax.random.normal(k_bias_big, (C_BIG,), dtype=jnp.float32)
    module_big = AddBias(bias_big)
    x4l = jax.random.normal(k_x4l, (4, C_BIG, 48, 48), dtype=jnp.float32)
    y4l = jax.block_until_ready(module_big(x4l))
    assert y4l.shape == x4l.shape and y4l.dtype == x4l.dtype
    assert jnp.allclose(y4l, x4l + bias_big.reshape(1, C_BIG, 1, 1), atol=1e-6, rtol=1e-6)

    # --- bf16 activations with f32 bias parameter: promotes to f32 like torch ---
    x4lb = x4l.astype(jnp.bfloat16)
    y4lb = jax.block_until_ready(module_big(x4lb))
    ref4lb = x4lb + bias_big.reshape(1, C_BIG, 1, 1)
    assert y4lb.dtype == ref4lb.dtype
    assert jnp.allclose(y4lb, ref4lb, atol=1e-6, rtol=1e-6)

    # --- tiny 2-D (RL logits): fused XLA fast path, no Pallas ---
    x2s = jax.random.normal(k_x2s, (2, C), dtype=jnp.float32)
    y2s = jax.block_until_ready(module(x2s))
    assert y2s.shape == x2s.shape and y2s.dtype == x2s.dtype
    assert jnp.allclose(y2s, x2s + bias_vec.reshape(1, C), atol=1e-6, rtol=1e-6)

    # --- larger 2-D: exercises the tiled, pipelined per-lane-bias Pallas kernel ---
    C2 = 256
    bias2 = jax.random.normal(k_bias2, (C2,), dtype=jnp.float32)
    module2 = AddBias(bias2)
    x2l = jax.random.normal(k_x2l, (2048, C2), dtype=jnp.float32)
    y2l = jax.block_until_ready(module2(x2l))
    assert y2l.shape == x2l.shape and y2l.dtype == x2l.dtype
    assert jnp.allclose(y2l, x2l + bias2.reshape(1, C2), atol=1e-6, rtol=1e-6)

    print("KERNEL_OK")
</pallas_src>

<mosaic_0001>
module attributes {stable_mosaic.version = 11 : i64} {
  func.func @_bias_add_kernel(%arg0: i32, %arg1: i32, %arg2: memref<256x2048xf32, #tpu.memory_space<vmem>>, %arg3: memref<256x1xf32, #tpu.memory_space<vmem>>, %arg4: memref<256x2048xf32, #tpu.memory_space<vmem>>) attributes {dimension_semantics = [#tpu.dimension_semantics<parallel>, #tpu.dimension_semantics<parallel>], iteration_bounds = array<i64: 1, 2>, scalar_prefetch = 0 : i64, scratch_operands = 0 : i64, tpu.core_type = #tpu.core_type<tc>, window_params = [{transform_indices = @transform_0, window_bounds = array<i64: 256, 2048>}, {transform_indices = @transform_1, window_bounds = array<i64: 256, 1>}, {transform_indices = @transform_2, window_bounds = array<i64: 256, 2048>}]} {
    %c0 = arith.constant 0 : index
    %c0_0 = arith.constant 0 : index
    %0 = vector.load %arg2[%c0, %c0_0] : memref<256x2048xf32, #tpu.memory_space<vmem>>, vector<256x2048xf32>
    %c0_1 = arith.constant 0 : index
    %c0_2 = arith.constant 0 : index
    %1 = vector.load %arg3[%c0_1, %c0_2] : memref<256x1xf32, #tpu.memory_space<vmem>>, vector<256x1xf32>
    %2 = vector.broadcast %1 : vector<256x1xf32> to vector<256x2048xf32>
    %3 = arith.addf %0, %2 : vector<256x2048xf32>
    %c0_3 = arith.constant 0 : index
    %c0_4 = arith.constant 0 : index
    %4 = vector.load %arg4[%c0_3, %c0_4] : memref<256x2048xf32, #tpu.memory_space<vmem>>, vector<256x2048xf32>
    tpu.vector_store %arg4[%c0_3, %c0_4], %3 {strides = array<i32>} : memref<256x2048xf32, #tpu.memory_space<vmem>>, vector<256x2048xf32>,
    return
  }
  func.func @transform_0(%arg0: i32, %arg1: i32) -> (i32, i32) {
    %c0_i32 = arith.constant 0 : i32
    return %arg0, %arg1 : i32, i32
  }
  func.func @transform_1(%arg0: i32, %arg1: i32) -> (i32, i32) {
    %c0_i32 = arith.constant 0 : i32
    %c0_i32_0 = arith.constant 0 : i32
    return %arg0, %c0_i32 : i32, i32
  }
  func.func @transform_2(%arg0: i32, %arg1: i32) -> (i32, i32) {
    %c0_i32 = arith.constant 0 : i32
    return %arg0, %arg1 : i32, i32
  }
}

</mosaic_0001>

<bundles_post_ra>
// kernel: tpu_custom_call.1
= control target key start
LH: loop header
LB: loop body
LE: loop exit
PB: predicated region body
PF: predicated region fallthrough
CT: control target
= control target key end

     0   :  { %7 = vsyncpa [#allocation3], 0  ;;  %s3627_s0 = inlined_call_operand.hbm [shape: f32[256,2304], index: 0, kind: input, shape index: {}]   ;;  %s3628_s1 = inlined_call_operand.vmem [shape: f32[256,1], index: 1, kind: input, shape index: {}]   ;;  %s3629_s2 = inlined_call_operand.hbm [shape: f32[256,2304], index: 2, kind: output, shape index: {}]  }
   0x1   :  { %9 = vsyncpa [#allocation3 + $0x1], 0 }
   0x2   :  { %10 = vsyncpa [#allocation4], 0 }
   0x3   :  { %12 = vsyncpa [#allocation4 + $0x1], 0  ;;  %s2333_s9 = smov 0   ;;  %s2335_s10 = smov 0  }
   0x4   :  { %s2337_s11 = smov 0   ;;  %s2339_s12 = smov 0  }
   0x5   :  { %s2341_s13 = smov 0   ;;  %s2343_s14 = smov 0  }
   0x6 LB: > { %s2082_s15 = sadd.s32 4294967295, %s2309_s14   ;;  %s2083_s16 = sadd.s32 4294967294, %s2309_s14   ;;  %s2309_s14 = sphi %s2343_s14, %s18_s14   ;;  %s2305_s13 = sphi %s2341_s13, %s3639_s13   ;;  %s2301_s12 = sphi %s2339_s12, %s3638_s12   ;;  %s2297_s11 = sphi %s2337_s11, %s3637_s11   ;;  %s2293_s10 = sphi %s2335_s10, %s3636_s10   ;;  %s2289_s9 = sphi %s2333_s9, %s3635_s9  }
   0x7   : > { %s27_s17 = sadd.s32 1, %s2305_s13  ;;  %s39_s18 = sadd.s32 1, %s2297_s11 }
   0x8   : > { %p28_p0 = scmp.ge.s32.totalorder %s27_s17, 2  ;;  %p46_p1 = scmp.ne.s32.totalorder %s2297_s11, %s2293_s10 }
   0x9   : > { %p47_p2 = scmp.eq.s32.totalorder %s2309_s14, 0  ;;  %p52_p3 = scmp.ne.s32.totalorder %s2293_s10, %s2289_s9 }
   0xa   : > { %s3641_s17 = smov (%p28_p0, %s27_s17), 0  ;;  %p53_p5 = scmp.eq.s32.totalorder %s2082_s15, 0 }
   0xb   : > { %p48_p4 = por %p47_p2, %p46_p1  ;;  %s35_s19 = ssub.s32 %s2305_s13, %s3641_s17 }
   0xc   : > { %p104_p6 = scmp.eq.s32.totalorder %s2082_s15, 1  ;;  %p37_p7 = scmp.eq.s32.totalorder %s35_s19, 0 }
   0xd   : > { %p2376_p8 = por %p53_p5, %p52_p3  ;;  %p110_p10 = scmp.eq.s32.totalorder %s2083_s16, 1 }
   0xe   : > { %p2380_p9 = por %p104_p6, %p46_p1  ;;  %p2086_p12 = scmp.ge.s32.totalorder %s2309_s14, 2 }
   0xf   : > { %s2385_s22 = scalar_select %p37_p7, %s2297_s11, %s39_s18  }
  0x10   : > { %p2387_p11 = por %p110_p10, %p52_p3  ;;  %135 = sbr.rel (%p2086_p12) target bundleno = 47 (0x2f), region = 20 }
  0x15   : > { %138 = sbr.rel (!%p48_p4) target bundleno = 47 (0x2f), region = 24  ;;  %s139_s24 = sand.u32 (%p48_p4), 1, %s2297_s11  }
  0x16   : > { %s2088_s25 = sshll.u32 (%p48_p4), %s2305_s13, 4  ;;  %s2087_s26 = sshll.u32 (%p48_p4), %s139_s24, 12 }
  0x17   : > { %s146_s27 = ssub.s32 (%p48_p4), 18, %s2088_s25  ;;  %s2399_s3 = scalar_lea.sflag (%p48_p4), [#allocation3], %s139_s24 }
  0x18   : > { %p147_p13 = scmp.lt.s32.totalorder (%p48_p4), %s146_s27, 16  ;;  %s143_s4 = scalar_lea.vmem (%p48_p4), [#allocation2], %s2087_s26 }
  0x1a   : > { %s3643_s27 = smov (!%p147_p13, %s146_s27), 16 }
  0x1b   : > { %s2089_s28 = sshll.u32 %s3643_s27, 8 }
  0x1c   : > { %s150_s29 = ssub.s32 4096, %s2089_s28 }
  0x1d   : > { %s151_s30 = sshll.u32 %s150_s29, 4 }
  0x1e   : > { %152 = vsyncadd %s2399_s3, %s151_s30  ;;  %p2402_p0 = scmp.ne.s32.totalorder %s2089_s28, 0  ;;  %s2108_s6 = sshll.u32 %s2305_s13, 7 }
  0x1f   : > { %s157_s15 = scalar_lea.hbm %s3627_s0, %s2108_s6  ;;  %s2092_s16 = sshll.u32 %s3643_s27, 3 }
  0x20   : > { %s160_s18 = sshll.u32 %s157_s15, 4  ;;  %s162_s19 = sshll.u32 %s143_s4, 4  ;;  %s161_s18 = int_to_ptr.hbm [resolvable:$true] %s160_s18  ;;  %s163_s19 = int_to_ptr.vmem [resolvable:$true] %s162_s19 }
  0x21   : > { %s2110_s24 = sshll.u32 %s3643_s27, 12  ;;  %s2196_s26 = sshra.s32 %s163_s19, 4  ;;  %s2197_s26 = int_to_ptr.vmem [resolvable:$true] %s2196_s26 }
  0x22   : > { %s2179_s25 = sshrl.u32 %s2110_s24, 4  ;;  %s2311_s28 = smov [#allocation2]  }
  0x23   : > { %s2203_s29 = scalar_lea.vmem %s2197_s26, %s2179_s25  ;;  %s2207_s30 = scalar_lea.vmem %s2311_s28, 8192 }
  0x24   : > { %p2204_p1 = scmp.ne.s32.totalorder %s2197_s26, %s2203_s29  ;;  %p2209_p4 = scmp.lt.s32.totalorder %s2207_s30, %s2203_s29 }
  0x26   : > { %p2205_p2 = pnand %p2204_p1, %p2402_p0 }
  0x28   : > { %p2206_p3 = pneg %p2205_p2 }
  0x2a   : > { %p2211_p5 = pnand %p2209_p4, %p2206_p3 }
  0x2c   : > { %2214 = shalt.err (!%p2211_p5)
}
  0x2d   : > { %s2312_s6 = smov 2304   ;;  %s2313_s4 = smov 2048  }
  0x2e   : > { %168 = dma.hbm_to_vmem [thread:$0]  (%p2402_p0), %s161_s18, %s2110_s24, %s163_s19, %s2399_s3, %s2312_s6, %s2313_s4, %s2092_s16  }
  0x2f PF: > { %p2095_p6 = scmp.ge.s32.totalorder %s2309_s14, 1  ;;  %p170_p7 = scmp.lt.s32.totalorder %s2309_s14, 3 }
  0x31   : > { %p171_p10 = pnand %p2095_p6, %p170_p7 }
  0x32   : > { %s2420_s27 = sand.u32 (!%p171_p10), 1, %s2293_s10  }
  0x33   : > { %174 = sbr.rel (%p171_p10) target bundleno = 696 (0x2b8), region = 28  ;;  %s2096_s7 = sshll.u32 (!%p171_p10), %s2420_s27, 12 }
  0x34   : > { %s177_s8 = scalar_lea.sflag (!%p171_p10), [#allocation3], %s2420_s27  ;;  %s2426_s5 = scalar_lea.vmem (!%p171_p10), [#allocation2], %s2096_s7 }
  0x38   : > { %2280 = dma.done.wait (%p2376_p8), %s177_s8, 65536  }
  0x39   : > { %2282 = vsyncadd (%p2376_p8), %s177_s8, 4294901760  ;;  %v2314_v0 = vmov 0   ;;  %v741_v1 = vld [vmem:[%s3628_s1 + $0x20] sm:$0xff]  ;;  %v739_v2 = vld [vmem:[%s3628_s1 + $0x10] sm:$0xff]  ;;  %s2538_s19 = scalar_lea.vmem [#allocation5], %s2096_s7  ;;  %s1954_s7 = scalar_lea.sflag [#allocation4], %s2420_s27 }
  0x3a   : > { %2176 = vset.pattern.permute.xlu2 %v2314_v0  ;;  %2175 = vset.pattern.permute.xlu1 %v2314_v0  ;;  %v737_v3 = vld [vmem:[%s3628_s1] sm:$0xff]  ;;  %v742_v4 = vld [vmem:[%s3628_s1 + $0x28] sm:$0xff]  ;;  %v740_v5 = vld [vmem:[%s3628_s1 + $0x18] sm:$0xff]  ;;  %s2099_s24 = sshll.u32 (%p2380_p9), %s2301_s12, 4 }
  0x3b   : > { %2174 = vset.pattern.permute.xlu0 %v2314_v0  ;;  %791 = vperm.xlu2 %2176, %v741_v1   ;;  %v738_v6 = vld [vmem:[%s3628_s1 + $0x8] sm:$0xff]  ;;  %v745_v7 = vld [vmem:[%s3628_s1 + $0x40] sm:$0xff]  ;;  %v744_v8 = vld [vmem:[%s3628_s1 + $0x38] sm:$0xff] }
  0x3c   : > { %781 = vperm.xlu1 %2175, %v739_v2   ;;  %771 = vperm.xlu0 %2174, %v737_v3   ;;  %v743_v9 = vld [vmem:[%s3628_s1 + $0x30] sm:$0xff]  ;;  %v748_v10 = vld [vmem:[%s3628_s1 + $0x58] sm:$0xff]  ;;  %v746_v12 = vld [vmem:[%s3628_s1 + $0x48] sm:$0xff] }
  0x3d   : > { %v747_v11 = vld [vmem:[%s3628_s1 + $0x50] sm:$0xff]  ;;  %v750_v14 = vld [vmem:[%s3628_s1 + $0x68] sm:$0xff]  ;;  %v749_v15 = vld [vmem:[%s3628_s1 + $0x60] sm:$0xff] }
  0x3e   : > { %v751_v13 = vld [vmem:[%s3628_s1 + $0x70] sm:$0xff]  ;;  %v754_v16 = vld [vmem:[%s3628_s1 + $0x88] sm:$0xff]  ;;  %v753_v17 = vld [vmem:[%s3628_s1 + $0x80] sm:$0xff] }
  0x3f   : > { %v752_v18 = vld [vmem:[%s3628_s1 + $0x78] sm:$0xff]  ;;  %v757_v19 = vld [vmem:[%s3628_s1 + $0xa0] sm:$0xff]  ;;  %v755_v21 = vld [vmem:[%s3628_s1 + $0x90] sm:$0xff] }
  0x40   : > { %v756_v20 = vld [vmem:[%s3628_s1 + $0x98] sm:$0xff]  ;;  %v759_v23 = vld [vmem:[%s3628_s1 + $0xb0] sm:$0xff]  ;;  %v758_v24 = vld [vmem:[%s3628_s1 + $0xa8] sm:$0xff] }
  0x41   : > { %v760_v22 = vld [vmem:[%s3628_s1 + $0xb8] sm:$0xff]  ;;  %v763_v25 = vld [vmem:[%s3628_s1 + $0xd0] sm:$0xff]  ;;  %v762_v26 = vld [vmem:[%s3628_s1 + $0xc8] sm:$0xff] }
  0x42   : > { %v761_v27 = vld [vmem:[%s3628_s1 + $0xc0] sm:$0xff]  ;;  %v766_v28 = vld [vmem:[%s3628_s1 + $0xe8] sm:$0xff]  ;;  %v764_v30 = vld [vmem:[%s3628_s1 + $0xd8] sm:$0xff] }
  0x43   : > { %796 = vperm.xlu2 %2176, %v742_v4   ;;  %v765_v29 = vld [vmem:[%s3628_s1 + $0xe0] sm:$0xff]  ;;  %v768_v31 = vld [vmem:[%s3628_s1 + $0xf8] sm:$0xff]  ;;  %v767_v32 = vld [vmem:[%s3628_s1 + $0xf0] sm:$0xff] }
  0x44   : > { %786 = vperm.xlu1 %2175, %v740_v5   ;;  %776 = vperm.xlu0 %2174, %v738_v6   ;;  %v289_v33 = vld [vmem:[%s2426_s5 + $0x200] sm:$0xff]  ;;  %v290_v34 = vld [vmem:[%s2426_s5 + $0x208] sm:$0xff]  ;;  %v291_v35 = vld [vmem:[%s2426_s5 + $0x210] sm:$0xff] }
  0x45   : > { %v292_v36 = vld [vmem:[%s2426_s5 + $0x218] sm:$0xff]  ;;  %v293_v38 = vld [vmem:[%s2426_s5 + $0x220] sm:$0xff]  ;;  %v294_v39 = vld [vmem:[%s2426_s5 + $0x228] sm:$0xff] }
  0x46   : > { %v295_v43 = vld [vmem:[%s2426_s5 + $0x230] sm:$0xff]  ;;  %v296_v45 = vld [vmem:[%s2426_s5 + $0x238] sm:$0xff]  ;;  %v297_v47 = vld [vmem:[%s2426_s5 + $0x240] sm:$0xff] }
  0x47   : > { %v298_v49 = vld [vmem:[%s2426_s5 + $0x248] sm:$0xff]  ;;  %v299_v51 = vld [vmem:[%s2426_s5 + $0x250] sm:$0xff]  ;;  %v300_v53 = vld [vmem:[%s2426_s5 + $0x258] sm:$0xff] }
  0x48   : > { %v301_v55 = vld [vmem:[%s2426_s5 + $0x260] sm:$0xff]  ;;  %v302_v57 = vld [vmem:[%s2426_s5 + $0x268] sm:$0xff]  ;;  %v303_v59 = vld [vmem:[%s2426_s5 + $0x270] sm:$0xff] }
  0x49   : > { %v304_v61 = vld [vmem:[%s2426_s5 + $0x278] sm:$0xff]  ;;  %v305_v0 = vld [vmem:[%s2426_s5 + $0x280] sm:$0xff]  ;;  %v306_v2 = vld [vmem:[%s2426_s5 + $0x288] sm:$0xff] }
  0x4a   : > { %v307_v5 = vld [vmem:[%s2426_s5 + $0x290] sm:$0xff]  ;;  %v308_v6 = vld [vmem:[%s2426_s5 + $0x298] sm:$0xff] }
  0x4b   : > { %811 = vperm.xlu2 %2176, %v745_v7  }
  0x4c   : > { %806 = vperm.xlu1 %2175, %v744_v8   ;;  %801 = vperm.xlu0 %2174, %v743_v9   ;;  %v309_v8 = vld [vmem:[%s2426_s5 + $0x2a0] sm:$0xff] }
  0x53   : > { %826 = vperm.xlu2 %2176, %v748_v10   ;;  %v310_v10 = vld [vmem:[%s2426_s5 + $0x2a8] sm:$0xff] }
  0x54   : > { %821 = vperm.xlu1 %2175, %v747_v11   ;;  %816 = vperm.xlu0 %2174, %v746_v12   ;;  %v311_v12 = vld [vmem:[%s2426_s5 + $0x2b0] sm:$0xff] }
  0x5b   : > { %841 = vperm.xlu2 %2176, %v751_v13  }
  0x5c   : > { %836 = vperm.xlu1 %2175, %v750_v14   ;;  %831 = vperm.xlu0 %2174, %v749_v15   ;;  %v312_v14 = vld [vmem:[%s2426_s5 + $0x2b8] sm:$0xff] }
  0x63   : > { %856 = vperm.xlu2 %2176, %v754_v16   ;;  %v313_v16 = vld [vmem:[%s2426_s5 + $0x2c0] sm:$0xff] }
  0x64   : > { %851 = vperm.xlu1 %2175, %v753_v17   ;;  %846 = vperm.xlu0 %2174, %v752_v18   ;;  %v314_v18 = vld [vmem:[%s2426_s5 + $0x2c8] sm:$0xff] }
  0x6b   : > { %871 = vperm.xlu2 %2176, %v757_v19  }
  0x6c   : > { %866 = vperm.xlu1 %2175, %v756_v20   ;;  %861 = vperm.xlu0 %2174, %v755_v21   ;;  %v315_v20 = vld [vmem:[%s2426_s5 + $0x2d0] sm:$0xff] }
  0x73   : > { %886 = vperm.xlu2 %2176, %v760_v22   ;;  %v316_v22 = vld [vmem:[%s2426_s5 + $0x2d8] sm:$0xff] }
  0x74   : > { %881 = vperm.xlu1 %2175, %v759_v23   ;;  %876 = vperm.xlu0 %2174, %v758_v24   ;;  %v317_v24 = vld [vmem:[%s2426_s5 + $0x2e0] sm:$0xff] }
  0x7b   : > { %901 = vperm.xlu2 %2176, %v763_v25  }
  0x7c   : > { %896 = vperm.xlu1 %2175, %v762_v26   ;;  %891 = vperm.xlu0 %2174, %v761_v27   ;;  %v318_v26 = vld [vmem:[%s2426_s5 + $0x2e8] sm:$0xff] }
  0x83   : > { %916 = vperm.xlu2 %2176, %v766_v28   ;;  %v319_v28 = vld [vmem:[%s2426_s5 + $0x2f0] sm:$0xff] }
  0x84   : > { %911 = vperm.xlu1 %2175, %v765_v29   ;;  %906 = vperm.xlu0 %2174, %v764_v30   ;;  %v320_v30 = vld [vmem:[%s2426_s5 + $0x2f8] sm:$0xff] }
  0x8c   : > { %926 = vperm.xlu1 %2175, %v768_v31   ;;  %921 = vperm.xlu0 %2174, %v767_v32  }
  0x95   : > { %v792_v37 = vpop.permute.xlu2 %791 }
  0x96   : > { %v993_v40 = vadd.f32 %v792_v37, %v289_v33  ;;  %v994_v41 = vadd.f32 %v792_v37, %v290_v34  ;;  %v995_v42 = vadd.f32 %v792_v37, %v291_v35  ;;  %v996_v44 = vadd.f32 %v792_v37, %v292_v36  ;;  %v353_v33 = vld [vmem:[%s2426_s5 + $0x400] sm:$0xff]  ;;  %v354_v35 = vld [vmem:[%s2426_s5 + $0x408] sm:$0xff] }
  0x97   : > { %v997_v46 = vadd.f32 %v792_v37, %v293_v38  ;;  %v998_v48 = vadd.f32 %v792_v37, %v294_v39  ;;  %v999_v50 = vadd.f32 %v792_v37, %v295_v43  ;;  %v1000_v52 = vadd.f32 %v792_v37, %v296_v45  ;;  %v355_v38 = vld [vmem:[%s2426_s5 + $0x410] sm:$0xff]  ;;  %v356_v39 = vld [vmem:[%s2426_s5 + $0x418] sm:$0xff]  ;;  %v358_v43 = vld [vmem:[%s2426_s5 + $0x428] sm:$0xff] }
  0x98   : > { %1505 = vst [vmem:[%s2538_s19 + $0x200] sm:$0xff] %v993_v40  ;;  %v1001_v54 = vadd.f32 %v792_v37, %v297_v47  ;;  %v1002_v56 = vadd.f32 %v792_v37, %v298_v49  ;;  %v1003_v58 = vadd.f32 %v792_v37, %v299_v51  ;;  %v1004_v60 = vadd.f32 %v792_v37, %v300_v53  ;;  %v359_v45 = vld [vmem:[%s2426_s5 + $0x430] sm:$0xff]  ;;  %v360_v47 = vld [vmem:[%s2426_s5 + $0x438] sm:$0xff]  ;;  %v361_v49 = vld [vmem:[%s2426_s5 + $0x440] sm:$0xff] }
  0x99   : > { %1506 = vst [vmem:[%s2538_s19 + $0x208] sm:$0xff] %v994_v41  ;;  %v1005_v62 = vadd.f32 %v792_v37, %v301_v55  ;;  %v1006_v63 = vadd.f32 %v792_v37, %v302_v57  ;;  %v1007_v1 = vadd.f32 %v792_v37, %v303_v59  ;;  %v1008_v3 = vadd.f32 %v792_v37, %v304_v61  ;;  %v357_v41 = vld [vmem:[%s2426_s5 + $0x420] sm:$0xff]  ;;  %v362_v51 = vld [vmem:[%s2426_s5 + $0x448] sm:$0xff]  ;;  %v363_v53 = vld [vmem:[%s2426_s5 + $0x450] sm:$0xff] }
  0x9a   : > { %1507 = vst [vmem:[%s2538_s19 + $0x210] sm:$0xff] %v995_v42  ;;  %v364_v55 = vld [vmem:[%s2426_s5 + $0x458] sm:$0xff]  ;;  %v365_v57 = vld [vmem:[%s2426_s5 + $0x460] sm:$0xff]  ;;  %v366_v59 = vld [vmem:[%s2426_s5 + $0x468] sm:$0xff] }
  0x9b   : > { %1508 = vst [vmem:[%s2538_s19 + $0x218] sm:$0xff] %v996_v44  ;;  %v367_v61 = vld [vmem:[%s2426_s5 + $0x470] sm:$0xff] }
  0x9c   : > { %1509 = vst [vmem:[%s2538_s19 + $0x220] sm:$0xff] %v997_v46 }
  0x9d   : > { %1510 = vst [vmem:[%s2538_s19 + $0x228] sm:$0xff] %v998_v48  ;;  %v797_v4 = vpop.permute.xlu2 %796 }
  0x9e   : > { %1511 = vst [vmem:[%s2538_s19 + $0x230] sm:$0xff] %v999_v50  ;;  %v1009_v7 = vadd.f32 %v797_v4, %v305_v0  ;;  %v1010_v9 = vadd.f32 %v797_v4, %v306_v2  ;;  %v1011_v11 = vadd.f32 %v797_v4, %v307_v5  ;;  %v1012_v13 = vadd.f32 %v797_v4, %v308_v6  ;;  %v401_v2 = vld [vmem:[%s2426_s5 + $0x580] sm:$0xff] }
  0x9f   : > { %1512 = vst [vmem:[%s2538_s19 + $0x238] sm:$0xff] %v1000_v52  ;;  %v1013_v15 = vadd.f32 %v797_v4, %v309_v8  ;;  %v1014_v17 = vadd.f32 %v797_v4, %v310_v10  ;;  %v1015_v19 = vadd.f32 %v797_v4, %v311_v12  ;;  %v1016_v21 = vadd.f32 %v797_v4, %v312_v14  ;;  %v404_v8 = vld [vmem:[%s2426_s5 + $0x598] sm:$0xff]  ;;  %v405_v10 = vld [vmem:[%s2426_s5 + $0x5a0] sm:$0xff]  ;;  %v406_v12 = vld [vmem:[%s2426_s5 + $0x5a8] sm:$0xff] }
  0xa0   : > { %1513 = vst [vmem:[%s2538_s19 + $0x240] sm:$0xff] %v1001_v54  ;;  %v1017_v23 = vadd.f32 %v797_v4, %v313_v16  ;;  %v1018_v25 = vadd.f32 %v797_v4, %v314_v18  ;;  %v1019_v27 = vadd.f32 %v797_v4, %v315_v20  ;;  %v1020_v29 = vadd.f32 %v797_v4, %v316_v22  ;;  %v407_v14 = vld [vmem:[%s2426_s5 + $0x5b0] sm:$0xff]  ;;  %v408_v16 = vld [vmem:[%s2426_s5 + $0x5b8] sm:$0xff]  ;;  %v409_v18 = vld [vmem:[%s2426_s5 + $0x5c0] sm:$0xff] }
  0xa1   : > { %1514 = vst [vmem:[%s2538_s19 + $0x248] sm:$0xff] %v1002_v56  ;;  %v1021_v31 = vadd.f32 %v797_v4, %v317_v24  ;;  %v1022_v32 = vadd.f32 %v797_v4, %v318_v26  ;;  %v1023_v34 = vadd.f32 %v797_v4, %v319_v28  ;;  %v1024_v36 = vadd.f32 %v797_v4, %v320_v30  ;;  %v402_v4 = vld [vmem:[%s2426_s5 + $0x588] sm:$0xff]  ;;  %v411_v22 = vld [vmem:[%s2426_s5 + $0x5d0] sm:$0xff]  ;;  %v412_v24 = vld [vmem:[%s2426_s5 + $0x5d8] sm:$0xff] }
  0xa2   : > { %1515 = vst [vmem:[%s2538_s19 + $0x250] sm:$0xff] %v1003_v58  ;;  %v410_v20 = vld [vmem:[%s2426_s5 + $0x5c8] sm:$0xff]  ;;  %v413_v26 = vld [vmem:[%s2426_s5 + $0x5e0] sm:$0xff]  ;;  %v415_v30 = vld [vmem:[%s2426_s5 + $0x5f0] sm:$0xff] }
  0xa3   : > { %1516 = vst [vmem:[%s2538_s19 + $0x258] sm:$0xff] %v1004_v60  ;;  %v414_v28 = vld [vmem:[%s2426_s5 + $0x5e8] sm:$0xff] }
  0xa4   : > { %1517 = vst [vmem:[%s2538_s19 + $0x260] sm:$0xff] %v1005_v62 }
  0xa5   : > { %1518 = vst [vmem:[%s2538_s19 + $0x268] sm:$0xff] %v1006_v63  ;;  %v812_v37 = vpop.permute.xlu2 %811  ;;  %v368_v63 = vld [vmem:[%s2426_s5 + $0x478] sm:$0xff] }
  0xa6   : > { %1519 = vst [vmem:[%s2538_s19 + $0x270] sm:$0xff] %v1007_v1  ;;  %v1057_v40 = vadd.f32 %v812_v37, %v353_v33  ;;  %v1058_v42 = vadd.f32 %v812_v37, %v354_v35  ;;  %v1059_v44 = vadd.f32 %v812_v37, %v355_v38  ;;  %v1060_v46 = vadd.f32 %v812_v37, %v356_v39  ;;  %v258_v38 = vld [vmem:[%s2426_s5 + $0x108] sm:$0xff] }
  0xa7   : > { %1520 = vst [vmem:[%s2538_s19 + $0x278] sm:$0xff] %v1008_v3  ;;  %v1061_v48 = vadd.f32 %v812_v37, %v357_v41  ;;  %v1062_v50 = vadd.f32 %v812_v37, %v358_v43  ;;  %v1063_v52 = vadd.f32 %v812_v37, %v359_v45  ;;  %v1064_v54 = vadd.f32 %v812_v37, %v360_v47  ;;  %v260_v41 = vld [vmem:[%s2426_s5 + $0x118] sm:$0xff]  ;;  %v261_v43 = vld [vmem:[%s2426_s5 + $0x120] sm:$0xff]  ;;  %v262_v45 = vld [vmem:[%s2426_s5 + $0x128] sm:$0xff] }
  0xa8   : > { %1521 = vst [vmem:[%s2538_s19 + $0x280] sm:$0xff] %v1009_v7  ;;  %v1065_v56 = vadd.f32 %v812_v37, %v361_v49  ;;  %v1066_v58 = vadd.f32 %v812_v37, %v362_v51  ;;  %v1067_v60 = vadd.f32 %v812_v37, %v363_v53  ;;  %v1068_v62 = vadd.f32 %v812_v37, %v364_v55  ;;  %v403_v7 = vld [vmem:[%s2426_s5 + $0x590] sm:$0xff]  ;;  %v264_v49 = vld [vmem:[%s2426_s5 + $0x138] sm:$0xff]  ;;  %v265_v51 = vld [vmem:[%s2426_s5 + $0x140] sm:$0xff] }
  0xa9   : > { %1522 = vst [vmem:[%s2538_s19 + $0x288] sm:$0xff] %v1010_v9  ;;  %v1069_v0 = vadd.f32 %v812_v37, %v365_v57  ;;  %v1070_v1 = vadd.f32 %v812_v37, %v366_v59  ;;  %v1071_v3 = vadd.f32 %v812_v37, %v367_v61  ;;  %v1072_v5 = vadd.f32 %v812_v37, %v368_v63  ;;  %v263_v47 = vld [vmem:[%s2426_s5 + $0x130] sm:$0xff]  ;;  %v266_v53 = vld [vmem:[%s2426_s5 + $0x148] sm:$0xff]  ;;  %v268_v57 = vld [vmem:[%s2426_s5 + $0x158] sm:$0xff] }
  0xaa   : > { %1523 = vst [vmem:[%s2538_s19 + $0x290] sm:$0xff] %v1011_v11  ;;  %v267_v55 = vld [vmem:[%s2426_s5 + $0x150] sm:$0xff]  ;;  %v269_v59 = vld [vmem:[%s2426_s5 + $0x160] sm:$0xff]  ;;  %v270_v61 = vld [vmem:[%s2426_s5 + $0x168] sm:$0xff] }
  0xab   : > { %1524 = vst [vmem:[%s2538_s19 + $0x298] sm:$0xff] %v1012_v13  ;;  %v271_v63 = vld [vmem:[%s2426_s5 + $0x170] sm:$0xff] }
  0xac   : > { %1525 = vst [vmem:[%s2538_s19 + $0x2a0] sm:$0xff] %v1013_v15 }
  0xad   : > { %1526 = vst [vmem:[%s2538_s19 + $0x2a8] sm:$0xff] %v1014_v17  ;;  %v827_v6 = vpop.permute.xlu2 %826 }
  0xae   : > { %1527 = vst [vmem:[%s2538_s19 + $0x2b0] sm:$0xff] %v1015_v19  ;;  %v1105_v9 = vadd.f32 %v827_v6, %v401_v2  ;;  %v1106_v11 = vadd.f32 %v827_v6, %v402_v4  ;;  %v1107_v13 = vadd.f32 %v827_v6, %v403_v7  ;;  %v1108_v15 = vadd.f32 %v827_v6, %v404_v8  ;;  %v782_v35 = vpop.permute.xlu1 %781  ;;  %v772_v4 = vpop.permute.xlu0 %771  ;;  %v226_v7 = vld [vmem:[%s2426_s5 + $0x8] sm:$0xff] }
  0xaf   : > { %1528 = vst [vmem:[%s2538_s19 + $0x2b8] sm:$0xff] %v1016_v21  ;;  %v1109_v17 = vadd.f32 %v827_v6, %v405_v10  ;;  %v1110_v19 = vadd.f32 %v827_v6, %v406_v12  ;;  %v1111_v21 = vadd.f32 %v827_v6, %v407_v14  ;;  %v1117_v33 = vadd.f32 %v827_v6, %v413_v26  ;;  %v228_v10 = vld [vmem:[%s2426_s5 + $0x18] sm:$0xff]  ;;  %v229_v12 = vld [vmem:[%s2426_s5 + $0x20] sm:$0xff]  ;;  %v230_v14 = vld [vmem:[%s2426_s5 + $0x28] sm:$0xff] }
  0xb0   : > { %1529 = vst [vmem:[%s2538_s19 + $0x2c0] sm:$0xff] %v1017_v23  ;;  %v1112_v23 = vadd.f32 %v827_v6, %v408_v16  ;;  %v1119_v37 = vadd.f32 %v827_v6, %v415_v30  ;;  %v973_v2 = vadd.f32 %v782_v35, %v269_v59  ;;  %v231_v16 = vld [vmem:[%s2426_s5 + $0x30] sm:$0xff]  ;;  %v236_v26 = vld [vmem:[%s2426_s5 + $0x58] sm:$0xff]  ;;  %v238_v30 = vld [vmem:[%s2426_s5 + $0x68] sm:$0xff] }
  0xb1   : > { %1530 = vst [vmem:[%s2538_s19 + $0x2c8] sm:$0xff] %v1018_v25  ;;  %v1113_v25 = vadd.f32 %v827_v6, %v409_v18  ;;  %v232_v18 = vld [vmem:[%s2426_s5 + $0x38] sm:$0xff] }
  0xb2   : > { %1531 = vst [vmem:[%s2538_s19 + $0x2d0] sm:$0xff] %v1019_v27  ;;  %v1114_v27 = vadd.f32 %v827_v6, %v410_v20  ;;  %v233_v20 = vld [vmem:[%s2426_s5 + $0x40] sm:$0xff]  ;;  %v460_v59 = vld [vmem:[%s2426_s5 + $0x758] sm:$0xff] }
  0xb3   : > { %1532 = vst [vmem:[%s2538_s19 + $0x2d8] sm:$0xff] %v1020_v29  ;;  %v1115_v29 = vadd.f32 %v827_v6, %v411_v22  ;;  %v234_v22 = vld [vmem:[%s2426_s5 + $0x48] sm:$0xff] }
  0xb4   : > { %1533 = vst [vmem:[%s2538_s19 + $0x2e0] sm:$0xff] %v1021_v31  ;;  %v1116_v31 = vadd.f32 %v827_v6, %v412_v24  ;;  %v235_v24 = vld [vmem:[%s2426_s5 + $0x50] sm:$0xff] }
  0xb5   : > { %1534 = vst [vmem:[%s2538_s19 + $0x2e8] sm:$0xff] %v1022_v32  ;;  %v416_v32 = vld [vmem:[%s2426_s5 + $0x5f8] sm:$0xff] }
  0xb6   : > { %1535 = vst [vmem:[%s2538_s19 + $0x2f0] sm:$0xff] %v1023_v34  ;;  %v1118_v34 = vadd.f32 %v827_v6, %v414_v28  ;;  %v1120_v39 = vadd.f32 %v827_v6, %v416_v32  ;;  %v975_v6 = vadd.f32 %v782_v35, %v271_v63  ;;  %v237_v28 = vld [vmem:[%s2426_s5 + $0x60] sm:$0xff]  ;;  %v239_v32 = vld [vmem:[%s2426_s5 + $0x70] sm:$0xff]  ;;  %v462_v63 = vld [vmem:[%s2426_s5 + $0x768] sm:$0xff] }
  0xb7   : > { %1536 = vst [vmem:[%s2538_s19 + $0x2f8] sm:$0xff] %v1024_v36  ;;  %v257_v36 = vld [vmem:[%s2426_s5 + $0x100] sm:$0xff] }
  0xb8   : > { %1569 = vst [vmem:[%s2538_s19 + $0x400] sm:$0xff] %v1057_v40  ;;  %v259_v40 = vld [vmem:[%s2426_s5 + $0x110] sm:$0xff] }
  0xb9   : > { %1570 = vst [vmem:[%s2538_s19 + $0x408] sm:$0xff] %v1058_v42  ;;  %v961_v42 = vadd.f32 %v782_v35, %v257_v36  ;;  %v942_v36 = vadd.f32 %v772_v4, %v238_v30  ;;  %v285_v30 = vld [vmem:[%s2426_s5 + $0x1e0] sm:$0xff] }
  0xba   : > { %1571 = vst [vmem:[%s2538_s19 + $0x410] sm:$0xff] %v1059_v44  ;;  %v962_v44 = vadd.f32 %v782_v35, %v258_v38  ;;  %v449_v38 = vld [vmem:[%s2426_s5 + $0x700] sm:$0xff] }
  0xbb   : > { %1572 = vst [vmem:[%s2538_s19 + $0x418] sm:$0xff] %v1060_v46  ;;  %v963_v46 = vadd.f32 %v782_v35, %v259_v40  ;;  %v450_v40 = vld [vmem:[%s2426_s5 + $0x708] sm:$0xff] }
  0xbc   : > { %1573 = vst [vmem:[%s2538_s19 + $0x420] sm:$0xff] %v1061_v48  ;;  %v964_v48 = vadd.f32 %v782_v35, %v260_v41 }
  0xbd   : > { %1574 = vst [vmem:[%s2538_s19 + $0x428] sm:$0xff] %v1062_v50  ;;  %v965_v50 = vadd.f32 %v782_v35, %v261_v43  ;;  %v452_v43 = vld [vmem:[%s2426_s5 + $0x718] sm:$0xff] }
  0xbe   : > { %1575 = vst [vmem:[%s2538_s19 + $0x430] sm:$0xff] %v1063_v52  ;;  %v966_v52 = vadd.f32 %v782_v35, %v262_v45  ;;  %v453_v45 = vld [vmem:[%s2426_s5 + $0x720] sm:$0xff] }
  0xbf   : > { %1576 = vst [vmem:[%s2538_s19 + $0x438] sm:$0xff] %v1064_v54  ;;  %v967_v54 = vadd.f32 %v782_v35, %v263_v47  ;;  %v454_v47 = vld [vmem:[%s2426_s5 + $0x728] sm:$0xff] }
  0xc0   : > { %1577 = vst [vmem:[%s2538_s19 + $0x440] sm:$0xff] %v1065_v56  ;;  %v968_v56 = vadd.f32 %v782_v35, %v264_v49  ;;  %v455_v49 = vld [vmem:[%s2426_s5 + $0x730] sm:$0xff] }
  0xc1   : > { %1578 = vst [vmem:[%s2538_s19 + $0x448] sm:$0xff] %v1066_v58  ;;  %v969_v58 = vadd.f32 %v782_v35, %v265_v51  ;;  %v456_v51 = vld [vmem:[%s2426_s5 + $0x738] sm:$0xff] }
  0xc2   : > { %1579 = vst [vmem:[%s2538_s19 + $0x450] sm:$0xff] %v1067_v60  ;;  %v970_v60 = vadd.f32 %v782_v35, %v266_v53  ;;  %v457_v53 = vld [vmem:[%s2426_s5 + $0x740] sm:$0xff] }
  0xc3   : > { %1580 = vst [vmem:[%s2538_s19 + $0x458] sm:$0xff] %v1068_v62  ;;  %v971_v62 = vadd.f32 %v782_v35, %v267_v55  ;;  %v458_v55 = vld [vmem:[%s2426_s5 + $0x748] sm:$0xff] }
  0xc4   : > { %1581 = vst [vmem:[%s2538_s19 + $0x460] sm:$0xff] %v1069_v0  ;;  %v972_v0 = vadd.f32 %v782_v35, %v268_v57  ;;  %v459_v57 = vld [vmem:[%s2426_s5 + $0x750] sm:$0xff] }
  0xc5   : > { %1582 = vst [vmem:[%s2538_s19 + $0x468] sm:$0xff] %v1070_v1  ;;  %v272_v1 = vld [vmem:[%s2426_s5 + $0x178] sm:$0xff] }
  0xc6   : > { %1583 = vst [vmem:[%s2538_s19 + $0x470] sm:$0xff] %v1071_v3  ;;  %v974_v3 = vadd.f32 %v782_v35, %v270_v61  ;;  %v976_v8 = vadd.f32 %v782_v35, %v272_v1  ;;  %v941_v35 = vadd.f32 %v772_v4, %v237_v28  ;;  %v461_v61 = vld [vmem:[%s2426_s5 + $0x760] sm:$0xff]  ;;  %v463_v1 = vld [vmem:[%s2426_s5 + $0x770] sm:$0xff]  ;;  %v284_v28 = vld [vmem:[%s2426_s5 + $0x1d8] sm:$0xff] }
  0xc7   : > { %1584 = vst [vmem:[%s2538_s19 + $0x478] sm:$0xff] %v1072_v5  ;;  %v225_v5 = vld [vmem:[%s2426_s5] sm:$0xff] }
  0xc8   : > { %1617 = vst [vmem:[%s2538_s19 + $0x580] sm:$0xff] %v1105_v9  ;;  %v227_v9 = vld [vmem:[%s2426_s5 + $0x10] sm:$0xff] }
  0xc9   : > { %1618 = vst [vmem:[%s2538_s19 + $0x588] sm:$0xff] %v1106_v11  ;;  %v929_v11 = vadd.f32 %v772_v4, %v225_v5 }
  0xca   : > { %1619 = vst [vmem:[%s2538_s19 + $0x590] sm:$0xff] %v1107_v13  ;;  %v930_v13 = vadd.f32 %v772_v4, %v226_v7  ;;  %v273_v7 = vld [vmem:[%s2426_s5 + $0x180] sm:$0xff] }
  0xcb   : > { %1620 = vst [vmem:[%s2538_s19 + $0x598] sm:$0xff] %v1108_v15  ;;  %v931_v15 = vadd.f32 %v772_v4, %v227_v9  ;;  %v274_v9 = vld [vmem:[%s2426_s5 + $0x188] sm:$0xff] }
  0xcc   : > { %1621 = vst [vmem:[%s2538_s19 + $0x5a0] sm:$0xff] %v1109_v17  ;;  %v932_v17 = vadd.f32 %v772_v4, %v228_v10 }
  0xcd   : > { %1622 = vst [vmem:[%s2538_s19 + $0x5a8] sm:$0xff] %v1110_v19  ;;  %v933_v19 = vadd.f32 %v772_v4, %v229_v12  ;;  %v276_v12 = vld [vmem:[%s2426_s5 + $0x198] sm:$0xff] }
  0xce   : > { %1623 = vst [vmem:[%s2538_s19 + $0x5b0] sm:$0xff] %v1111_v21  ;;  %v934_v21 = vadd.f32 %v772_v4, %v230_v14  ;;  %v277_v14 = vld [vmem:[%s2426_s5 + $0x1a0] sm:$0xff] }
  0xcf   : > { %1624 = vst [vmem:[%s2538_s19 + $0x5b8] sm:$0xff] %v1112_v23  ;;  %v935_v23 = vadd.f32 %v772_v4, %v231_v16  ;;  %v278_v16 = vld [vmem:[%s2426_s5 + $0x1a8] sm:$0xff] }
  0xd0   : > { %1625 = vst [vmem:[%s2538_s19 + $0x5c0] sm:$0xff] %v1113_v25  ;;  %v936_v25 = vadd.f32 %v772_v4, %v232_v18  ;;  %v279_v18 = vld [vmem:[%s2426_s5 + $0x1b0] sm:$0xff] }
  0xd1   : > { %1626 = vst [vmem:[%s2538_s19 + $0x5c8] sm:$0xff] %v1114_v27  ;;  %v937_v27 = vadd.f32 %v772_v4, %v233_v20  ;;  %v280_v20 = vld [vmem:[%s2426_s5 + $0x1b8] sm:$0xff] }
  0xd2   : > { %1627 = vst [vmem:[%s2538_s19 + $0x5d0] sm:$0xff] %v1115_v29  ;;  %v938_v29 = vadd.f32 %v772_v4, %v234_v22  ;;  %v281_v22 = vld [vmem:[%s2426_s5 + $0x1c0] sm:$0xff] }
  0xd3   : > { %1628 = vst [vmem:[%s2538_s19 + $0x5d8] sm:$0xff] %v1116_v31  ;;  %v939_v31 = vadd.f32 %v772_v4, %v235_v24  ;;  %v282_v24 = vld [vmem:[%s2426_s5 + $0x1c8] sm:$0xff] }
  0xd4   : > { %1629 = vst [vmem:[%s2538_s19 + $0x5e0] sm:$0xff] %v1117_v33  ;;  %v940_v33 = vadd.f32 %v772_v4, %v236_v26  ;;  %v283_v26 = vld [vmem:[%s2426_s5 + $0x1d0] sm:$0xff] }
  0xd5   : > { %1630 = vst [vmem:[%s2538_s19 + $0x5e8] sm:$0xff] %v1118_v34  ;;  %v240_v34 = vld [vmem:[%s2426_s5 + $0x78] sm:$0xff] }
  0xd6   : > { %1631 = vst [vmem:[%s2538_s19 + $0x5f0] sm:$0xff] %v1119_v37  ;;  %v842_v37 = vpop.permute.xlu2 %841  ;;  %v944_v41 = vadd.f32 %v772_v4, %v240_v34  ;;  %v287_v34 = vld [vmem:[%s2426_s5 + $0x1f0] sm:$0xff] }
  0xd7   : > { %1632 = vst [vmem:[%s2538_s19 + $0x5f8] sm:$0xff] %v1120_v39  ;;  %v943_v39 = vadd.f32 %v772_v4, %v239_v32  ;;  %v1165_v4 = vadd.f32 %v842_v37, %v461_v61  ;;  %v1166_v5 = vadd.f32 %v842_v37, %v462_v63  ;;  %v286_v32 = vld [vmem:[%s2426_s5 + $0x1e8] sm:$0xff]  ;;  %v252_v61 = vld [vmem:[%s2426_s5 + $0xd8] sm:$0xff]  ;;  %v253_v63 = vld [vmem:[%s2426_s5 + $0xe0] sm:$0xff] }
  0xd8   : > { %1473 = vst [vmem:[%s2538_s19 + $0x100] sm:$0xff] %v961_v42  ;;  %v451_v42 = vld [vmem:[%s2426_s5 + $0x710] sm:$0xff] }
  0xd9   : > { %1474 = vst [vmem:[%s2538_s19 + $0x108] sm:$0xff] %v962_v44  ;;  %v1153_v44 = vadd.f32 %v842_v37, %v449_v38 }
  0xda   : > { %1475 = vst [vmem:[%s2538_s19 + $0x110] sm:$0xff] %v963_v46  ;;  %v1154_v46 = vadd.f32 %v842_v37, %v450_v40  ;;  %v241_v40 = vld [vmem:[%s2426_s5 + $0x80] sm:$0xff] }
  0xdb   : > { %1476 = vst [vmem:[%s2538_s19 + $0x118] sm:$0xff] %v964_v48  ;;  %v1155_v48 = vadd.f32 %v842_v37, %v451_v42  ;;  %v242_v42 = vld [vmem:[%s2426_s5 + $0x88] sm:$0xff] }
  0xdc   : > { %1477 = vst [vmem:[%s2538_s19 + $0x120] sm:$0xff] %v965_v50  ;;  %v1156_v50 = vadd.f32 %v842_v37, %v452_v43 }
  0xdd   : > { %1478 = vst [vmem:[%s2538_s19 + $0x128] sm:$0xff] %v966_v52  ;;  %v1157_v52 = vadd.f32 %v842_v37, %v453_v45  ;;  %v244_v45 = vld [vmem:[%s2426_s5 + $0x98] sm:$0xff] }
  0xde   : > { %1479 = vst [vmem:[%s2538_s19 + $0x130] sm:$0xff] %v967_v54  ;;  %v1158_v54 = vadd.f32 %v842_v37, %v454_v47  ;;  %v245_v47 = vld [vmem:[%s2426_s5 + $0xa0] sm:$0xff] }
  0xdf   : > { %1480 = vst [vmem:[%s2538_s19 + $0x138] sm:$0xff] %v968_v56  ;;  %v1159_v56 = vadd.f32 %v842_v37, %v455_v49  ;;  %v246_v49 = vld [vmem:[%s2426_s5 + $0xa8] sm:$0xff] }
  0xe0   : > { %1481 = vst [vmem:[%s2538_s19 + $0x140] sm:$0xff] %v969_v58  ;;  %v1160_v58 = vadd.f32 %v842_v37, %v456_v51  ;;  %v247_v51 = vld [vmem:[%s2426_s5 + $0xb0] sm:$0xff] }
  0xe1   : > { %1482 = vst [vmem:[%s2538_s19 + $0x148] sm:$0xff] %v970_v60  ;;  %v1161_v60 = vadd.f32 %v842_v37, %v457_v53  ;;  %v248_v53 = vld [vmem:[%s2426_s5 + $0xb8] sm:$0xff] }
  0xe2   : > { %1483 = vst [vmem:[%s2538_s19 + $0x150] sm:$0xff] %v971_v62  ;;  %v1162_v62 = vadd.f32 %v842_v37, %v458_v55  ;;  %v249_v55 = vld [vmem:[%s2426_s5 + $0xc0] sm:$0xff] }
  0xe3   : > { %1484 = vst [vmem:[%s2538_s19 + $0x158] sm:$0xff] %v972_v0  ;;  %v1163_v0 = vadd.f32 %v842_v37, %v459_v57  ;;  %v250_v57 = vld [vmem:[%s2426_s5 + $0xc8] sm:$0xff] }
  0xe4   : > { %1485 = vst [vmem:[%s2538_s19 + $0x160] sm:$0xff] %v973_v2  ;;  %v1164_v2 = vadd.f32 %v842_v37, %v460_v59  ;;  %v251_v59 = vld [vmem:[%s2426_s5 + $0xd0] sm:$0xff] }
  0xe5   : > { %1486 = vst [vmem:[%s2538_s19 + $0x168] sm:$0xff] %v974_v3  ;;  %v464_v3 = vld [vmem:[%s2426_s5 + $0x778] sm:$0xff] }
  0xe6   : > { %1487 = vst [vmem:[%s2538_s19 + $0x170] sm:$0xff] %v975_v6  ;;  %v787_v6 = vpop.permute.xlu1 %786  ;;  %v1168_v10 = vadd.f32 %v842_v37, %v464_v3  ;;  %v255_v3 = vld [vmem:[%s2426_s5 + $0xf0] sm:$0xff] }
  0xe7   : > { %1488 = vst [vmem:[%s2538_s19 + $0x178] sm:$0xff] %v976_v8  ;;  %v1167_v8 = vadd.f32 %v842_v37, %v463_v1  ;;  %v989_v37 = vadd.f32 %v787_v6, %v285_v30  ;;  %v990_v38 = vadd.f32 %v787_v6, %v286_v32  ;;  %v254_v1 = vld [vmem:[%s2426_s5 + $0xe8] sm:$0xff]  ;;  %v508_v30 = vld [vmem:[%s2426_s5 + $0x8d8] sm:$0xff]  ;;  %v509_v32 = vld [vmem:[%s2426_s5 + $0x8e0] sm:$0xff] }
  0xe8   : > { %1441 = vst [vmem:[%s2538_s19] sm:$0xff] %v929_v11  ;;  %v275_v11 = vld [vmem:[%s2426_s5 + $0x190] sm:$0xff] }
  0xe9   : > { %1442 = vst [vmem:[%s2538_s19 + $0x8] sm:$0xff] %v930_v13  ;;  %v977_v13 = vadd.f32 %v787_v6, %v273_v7 }
  0xea   : > { %1443 = vst [vmem:[%s2538_s19 + $0x10] sm:$0xff] %v931_v15  ;;  %v978_v15 = vadd.f32 %v787_v6, %v274_v9  ;;  %v497_v9 = vld [vmem:[%s2426_s5 + $0x880] sm:$0xff] }
  0xeb   : > { %1444 = vst [vmem:[%s2538_s19 + $0x18] sm:$0xff] %v932_v17  ;;  %v979_v17 = vadd.f32 %v787_v6, %v275_v11  ;;  %v498_v11 = vld [vmem:[%s2426_s5 + $0x888] sm:$0xff] }
  0xec   : > { %1445 = vst [vmem:[%s2538_s19 + $0x20] sm:$0xff] %v933_v19  ;;  %v980_v19 = vadd.f32 %v787_v6, %v276_v12 }
  0xed   : > { %1446 = vst [vmem:[%s2538_s19 + $0x28] sm:$0xff] %v934_v21  ;;  %v981_v21 = vadd.f32 %v787_v6, %v277_v14  ;;  %v500_v14 = vld [vmem:[%s2426_s5 + $0x898] sm:$0xff] }
  0xee   : > { %1447 = vst [vmem:[%s2538_s19 + $0x30] sm:$0xff] %v935_v23  ;;  %v982_v23 = vadd.f32 %v787_v6, %v278_v16  ;;  %v501_v16 = vld [vmem:[%s2426_s5 + $0x8a0] sm:$0xff] }
  0xef   : > { %1448 = vst [vmem:[%s2538_s19 + $0x38] sm:$0xff] %v936_v25  ;;  %v983_v25 = vadd.f32 %v787_v6, %v279_v18  ;;  %v502_v18 = vld [vmem:[%s2426_s5 + $0x8a8] sm:$0xff] }
  0xf0   : > { %1449 = vst [vmem:[%s2538_s19 + $0x40] sm:$0xff] %v937_v27  ;;  %v984_v27 = vadd.f32 %v787_v6, %v280_v20  ;;  %v503_v20 = vld [vmem:[%s2426_s5 + $0x8b0] sm:$0xff] }
  0xf1   : > { %1450 = vst [vmem:[%s2538_s19 + $0x48] sm:$0xff] %v938_v29  ;;  %v985_v29 = vadd.f32 %v787_v6, %v281_v22  ;;  %v504_v22 = vld [vmem:[%s2426_s5 + $0x8b8] sm:$0xff] }
  0xf2   : > { %1451 = vst [vmem:[%s2538_s19 + $0x50] sm:$0xff] %v939_v31  ;;  %v986_v31 = vadd.f32 %v787_v6, %v282_v24  ;;  %v505_v24 = vld [vmem:[%s2426_s5 + $0x8c0] sm:$0xff] }
  0xf3   : > { %1452 = vst [vmem:[%s2538_s19 + $0x58] sm:$0xff] %v940_v33  ;;  %v987_v33 = vadd.f32 %v787_v6, %v283_v26  ;;  %v506_v26 = vld [vmem:[%s2426_s5 + $0x8c8] sm:$0xff] }
  0xf4   : > { %1453 = vst [vmem:[%s2538_s19 + $0x60] sm:$0xff] %v941_v35  ;;  %v988_v35 = vadd.f32 %v787_v6, %v284_v28  ;;  %v507_v28 = vld [vmem:[%s2426_s5 + $0x8d0] sm:$0xff] }
  0xf5   : > { %1454 = vst [vmem:[%s2538_s19 + $0x68] sm:$0xff] %v942_v36  ;;  %v288_v36 = vld [vmem:[%s2426_s5 + $0x1f8] sm:$0xff] }
  0xf6   : > { %1455 = vst [vmem:[%s2538_s19 + $0x70] sm:$0xff] %v943_v39  ;;  %v777_v39 = vpop.permute.xlu0 %776  ;;  %v992_v43 = vadd.f32 %v787_v6, %v288_v36  ;;  %v511_v36 = vld [vmem:[%s2426_s5 + $0x8f0] sm:$0xff] }
  0xf7   : > { %1456 = vst [vmem:[%s2538_s19 + $0x78] sm:$0xff] %v944_v41  ;;  %v991_v41 = vadd.f32 %v787_v6, %v287_v34  ;;  %v957_v6 = vadd.f32 %v777_v39, %v253_v63  ;;  %v958_v7 = vadd.f32 %v777_v39, %v254_v1  ;;  %v510_v34 = vld [vmem:[%s2426_s5 + $0x8e8] sm:$0xff]  ;;  %v348_v63 = vld [vmem:[%s2426_s5 + $0x3d8] sm:$0xff]  ;;  %v349_v1 = vld [vmem:[%s2426_s5 + $0x3e0] sm:$0xff] }
  0xf8   : > { %1665 = vst [vmem:[%s2538_s19 + $0x700] sm:$0xff] %v1153_v44  ;;  %v243_v44 = vld [vmem:[%s2426_s5 + $0x90] sm:$0xff] }
  0xf9   : > { %1666 = vst [vmem:[%s2538_s19 + $0x708] sm:$0xff] %v1154_v46  ;;  %v945_v46 = vadd.f32 %v777_v39, %v241_v40 }
  0xfa   : > { %1667 = vst [vmem:[%s2538_s19 + $0x710] sm:$0xff] %v1155_v48  ;;  %v946_v48 = vadd.f32 %v777_v39, %v242_v42  ;;  %v337_v42 = vld [vmem:[%s2426_s5 + $0x380] sm:$0xff] }
  0xfb   : > { %1668 = vst [vmem:[%s2538_s19 + $0x718] sm:$0xff] %v1156_v50  ;;  %v947_v50 = vadd.f32 %v777_v39, %v243_v44  ;;  %v338_v44 = vld [vmem:[%s2426_s5 + $0x388] sm:$0xff] }
  0xfc   : > { %1669 = vst [vmem:[%s2538_s19 + $0x720] sm:$0xff] %v1157_v52  ;;  %v948_v52 = vadd.f32 %v777_v39, %v244_v45 }
  0xfd   : > { %1670 = vst [vmem:[%s2538_s19 + $0x728] sm:$0xff] %v1158_v54  ;;  %v949_v54 = vadd.f32 %v777_v39, %v245_v47  ;;  %v340_v47 = vld [vmem:[%s2426_s5 + $0x398] sm:$0xff] }
  0xfe   : > { %1671 = vst [vmem:[%s2538_s19 + $0x730] sm:$0xff] %v1159_v56  ;;  %v950_v56 = vadd.f32 %v777_v39, %v246_v49  ;;  %v341_v49 = vld [vmem:[%s2426_s5 + $0x3a0] sm:$0xff] }
  0xff   : > { %1672 = vst [vmem:[%s2538_s19 + $0x738] sm:$0xff] %v1160_v58  ;;  %v951_v58 = vadd.f32 %v777_v39, %v247_v51  ;;  %v342_v51 = vld [vmem:[%s2426_s5 + $0x3a8] sm:$0xff] }
 0x100   : > { %1673 = vst [vmem:[%s2538_s19 + $0x740] sm:$0xff] %v1161_v60  ;;  %v952_v60 = vadd.f32 %v777_v39, %v248_v53  ;;  %v343_v53 = vld [vmem:[%s2426_s5 + $0x3b0] sm:$0xff] }
 0x101   : > { %1674 = vst [vmem:[%s2538_s19 + $0x748] sm:$0xff] %v1162_v62  ;;  %v953_v62 = vadd.f32 %v777_v39, %v249_v55  ;;  %v344_v55 = vld [vmem:[%s2426_s5 + $0x3b8] sm:$0xff] }
 0x102   : > { %1675 = vst [vmem:[%s2538_s19 + $0x750] sm:$0xff] %v1163_v0  ;;  %v954_v0 = vadd.f32 %v777_v39, %v250_v57  ;;  %v345_v57 = vld [vmem:[%s2426_s5 + $0x3c0] sm:$0xff] }
 0x103   : > { %1676 = vst [vmem:[%s2538_s19 + $0x758] sm:$0xff] %v1164_v2  ;;  %v955_v2 = vadd.f32 %v777_v39, %v251_v59  ;;  %v346_v59 = vld [vmem:[%s2426_s5 + $0x3c8] sm:$0xff] }
 0x104   : > { %1677 = vst [vmem:[%s2538_s19 + $0x760] sm:$0xff] %v1165_v4  ;;  %v956_v4 = vadd.f32 %v777_v39, %v252_v61  ;;  %v347_v61 = vld [vmem:[%s2426_s5 + $0x3d0] sm:$0xff] }
 0x105   : > { %1678 = vst [vmem:[%s2538_s19 + $0x768] sm:$0xff] %v1166_v5  ;;  %v256_v5 = vld [vmem:[%s2426_s5 + $0xf8] sm:$0xff] }
 0x106   : > { %1679 = vst [vmem:[%s2538_s19 + $0x770] sm:$0xff] %v1167_v8  ;;  %v857_v8 = vpop.permute.xlu2 %856  ;;  %v960_v12 = vadd.f32 %v777_v39, %v256_v5  ;;  %v351_v5 = vld [vmem:[%s2426_s5 + $0x3f0] sm:$0xff] }
 0x107   : > { %1680 = vst [vmem:[%s2538_s19 + $0x778] sm:$0xff] %v1168_v10  ;;  %v959_v10 = vadd.f32 %v777_v39, %v255_v3  ;;  %v1213_v39 = vadd.f32 %v857_v8, %v509_v32  ;;  %v1214_v40 = vadd.f32 %v857_v8, %v510_v34  ;;  %v350_v3 = vld [vmem:[%s2426_s5 + $0x3e8] sm:$0xff]  ;;  %v332_v32 = vld [vmem:[%s2426_s5 + $0x358] sm:$0xff]  ;;  %v333_v34 = vld [vmem:[%s2426_s5 + $0x360] sm:$0xff] }
 0x108   : > { %1489 = vst [vmem:[%s2538_s19 + $0x180] sm:$0xff] %v977_v13  ;;  %v499_v13 = vld [vmem:[%s2426_s5 + $0x890] sm:$0xff] }
 0x109   : > { %1490 = vst [vmem:[%s2538_s19 + $0x188] sm:$0xff] %v978_v15  ;;  %v1201_v15 = vadd.f32 %v857_v8, %v497_v9 }
 0x10a   : > { %1491 = vst [vmem:[%s2538_s19 + $0x190] sm:$0xff] %v979_v17  ;;  %v1202_v17 = vadd.f32 %v857_v8, %v498_v11  ;;  %v321_v11 = vld [vmem:[%s2426_s5 + $0x300] sm:$0xff] }
 0x10b   : > { %1492 = vst [vmem:[%s2538_s19 + $0x198] sm:$0xff] %v980_v19  ;;  %v1203_v19 = vadd.f32 %v857_v8, %v499_v13  ;;  %v322_v13 = vld [vmem:[%s2426_s5 + $0x308] sm:$0xff] }
 0x10c   : > { %1493 = vst [vmem:[%s2538_s19 + $0x1a0] sm:$0xff] %v981_v21  ;;  %v1204_v21 = vadd.f32 %v857_v8, %v500_v14 }
 0x10d   : > { %1494 = vst [vmem:[%s2538_s19 + $0x1a8] sm:$0xff] %v982_v23  ;;  %v1205_v23 = vadd.f32 %v857_v8, %v501_v16  ;;  %v324_v16 = vld [vmem:[%s2426_s5 + $0x318] sm:$0xff] }
 0x10e   : > { %1495 = vst [vmem:[%s2538_s19 + $0x1b0] sm:$0xff] %v983_v25  ;;  %v1206_v25 = vadd.f32 %v857_v8, %v502_v18  ;;  %v325_v18 = vld [vmem:[%s2426_s5 + $0x320] sm:$0xff] }
 0x10f   : > { %1496 = vst [vmem:[%s2538_s19 + $0x1b8] sm:$0xff] %v984_v27  ;;  %v1207_v27 = vadd.f32 %v857_v8, %v503_v20  ;;  %v326_v20 = vld [vmem:[%s2426_s5 + $0x328] sm:$0xff] }
 0x110   : > { %1497 = vst [vmem:[%s2538_s19 + $0x1c0] sm:$0xff] %v985_v29  ;;  %v1208_v29 = vadd.f32 %v857_v8, %v504_v22  ;;  %v327_v22 = vld [vmem:[%s2426_s5 + $0x330] sm:$0xff] }
 0x111   : > { %1498 = vst [vmem:[%s2538_s19 + $0x1c8] sm:$0xff] %v986_v31  ;;  %v1209_v31 = vadd.f32 %v857_v8, %v505_v24  ;;  %v328_v24 = vld [vmem:[%s2426_s5 + $0x338] sm:$0xff] }
 0x112   : > { %1499 = vst [vmem:[%s2538_s19 + $0x1d0] sm:$0xff] %v987_v33  ;;  %v1210_v33 = vadd.f32 %v857_v8, %v506_v26  ;;  %v329_v26 = vld [vmem:[%s2426_s5 + $0x340] sm:$0xff] }
 0x113   : > { %1500 = vst [vmem:[%s2538_s19 + $0x1d8] sm:$0xff] %v988_v35  ;;  %v1211_v35 = vadd.f32 %v857_v8, %v507_v28  ;;  %v330_v28 = vld [vmem:[%s2426_s5 + $0x348] sm:$0xff] }
 0x114   : > { %1501 = vst [vmem:[%s2538_s19 + $0x1e0] sm:$0xff] %v989_v37  ;;  %v1212_v37 = vadd.f32 %v857_v8, %v508_v30  ;;  %v331_v30 = vld [vmem:[%s2426_s5 + $0x350] sm:$0xff] }
 0x115   : > { %1502 = vst [vmem:[%s2538_s19 + $0x1e8] sm:$0xff] %v990_v38  ;;  %v512_v38 = vld [vmem:[%s2426_s5 + $0x8f8] sm:$0xff] }
 0x116   : > { %1503 = vst [vmem:[%s2538_s19 + $0x1f0] sm:$0xff] %v991_v41  ;;  %v807_v41 = vpop.permute.xlu1 %806  ;;  %v1216_v45 = vadd.f32 %v857_v8, %v512_v38  ;;  %v335_v38 = vld [vmem:[%s2426_s5 + $0x370] sm:$0xff] }
 0x117   : > { %1504 = vst [vmem:[%s2538_s19 + $0x1f8] sm:$0xff] %v992_v43  ;;  %v1215_v43 = vadd.f32 %v857_v8, %v511_v36  ;;  %v1053_v8 = vadd.f32 %v807_v41, %v349_v1  ;;  %v1054_v9 = vadd.f32 %v807_v41, %v350_v3  ;;  %v334_v36 = vld [vmem:[%s2426_s5 + $0x368] sm:$0xff]  ;;  %v556_v1 = vld [vmem:[%s2426_s5 + $0xa58] sm:$0xff]  ;;  %v557_v3 = vld [vmem:[%s2426_s5 + $0xa60] sm:$0xff] }
 0x118   : > { %1457 = vst [vmem:[%s2538_s19 + $0x80] sm:$0xff] %v945_v46  ;;  %v339_v46 = vld [vmem:[%s2426_s5 + $0x390] sm:$0xff] }
 0x119   : > { %1458 = vst [vmem:[%s2538_s19 + $0x88] sm:$0xff] %v946_v48  ;;  %v1041_v48 = vadd.f32 %v807_v41, %v337_v42 }
 0x11a   : > { %1459 = vst [vmem:[%s2538_s19 + $0x90] sm:$0xff] %v947_v50  ;;  %v1042_v50 = vadd.f32 %v807_v41, %v338_v44  ;;  %v545_v44 = vld [vmem:[%s2426_s5 + $0xa00] sm:$0xff] }
 0x11b   : > { %1460 = vst [vmem:[%s2538_s19 + $0x98] sm:$0xff] %v948_v52  ;;  %v1043_v52 = vadd.f32 %v807_v41, %v339_v46  ;;  %v546_v46 = vld [vmem:[%s2426_s5 + $0xa08] sm:$0xff] }
 0x11c   : > { %1461 = vst [vmem:[%s2538_s19 + $0xa0] sm:$0xff] %v949_v54  ;;  %v1044_v54 = vadd.f32 %v807_v41, %v340_v47 }
 0x11d   : > { %1462 = vst [vmem:[%s2538_s19 + $0xa8] sm:$0xff] %v950_v56  ;;  %v1045_v56 = vadd.f32 %v807_v41, %v341_v49  ;;  %v548_v49 = vld [vmem:[%s2426_s5 + $0xa18] sm:$0xff] }
 0x11e   : > { %1463 = vst [vmem:[%s2538_s19 + $0xb0] sm:$0xff] %v951_v58  ;;  %v1046_v58 = vadd.f32 %v807_v41, %v342_v51  ;;  %v549_v51 = vld [vmem:[%s2426_s5 + $0xa20] sm:$0xff] }
 0x11f   : > { %1464 = vst [vmem:[%s2538_s19 + $0xb8] sm:$0xff] %v952_v60  ;;  %v1047_v60 = vadd.f32 %v807_v41, %v343_v53  ;;  %v550_v53 = vld [vmem:[%s2426_s5 + $0xa28] sm:$0xff] }
 0x120   : > { %1465 = vst [vmem:[%s2538_s19 + $0xc0] sm:$0xff] %v953_v62  ;;  %v1048_v62 = vadd.f32 %v807_v41, %v344_v55  ;;  %v551_v55 = vld [vmem:[%s2426_s5 + $0xa30] sm:$0xff] }
 0x121   : > { %1466 = vst [vmem:[%s2538_s19 + $0xc8] sm:$0xff] %v954_v0  ;;  %v1049_v0 = vadd.f32 %v807_v41, %v345_v57  ;;  %v552_v57 = vld [vmem:[%s2426_s5 + $0xa38] sm:$0xff] }
 0x122   : > { %1467 = vst [vmem:[%s2538_s19 + $0xd0] sm:$0xff] %v955_v2  ;;  %v1050_v2 = vadd.f32 %v807_v41, %v346_v59  ;;  %v553_v59 = vld [vmem:[%s2426_s5 + $0xa40] sm:$0xff] }
 0x123   : > { %1468 = vst [vmem:[%s2538_s19 + $0xd8] sm:$0xff] %v956_v4  ;;  %v1051_v4 = vadd.f32 %v807_v41, %v347_v61  ;;  %v554_v61 = vld [vmem:[%s2426_s5 + $0xa48] sm:$0xff] }
 0x124   : > { %1469 = vst [vmem:[%s2538_s19 + $0xe0] sm:$0xff] %v957_v6  ;;  %v1052_v6 = vadd.f32 %v807_v41, %v348_v63  ;;  %v555_v63 = vld [vmem:[%s2426_s5 + $0xa50] sm:$0xff] }
 0x125   : > { %1470 = vst [vmem:[%s2538_s19 + $0xe8] sm:$0xff] %v958_v7  ;;  %v352_v7 = vld [vmem:[%s2426_s5 + $0x3f8] sm:$0xff] }
 0x126   : > { %1471 = vst [vmem:[%s2538_s19 + $0xf0] sm:$0xff] %v959_v10  ;;  %v802_v10 = vpop.permute.xlu0 %801  ;;  %v1056_v14 = vadd.f32 %v807_v41, %v352_v7  ;;  %v559_v7 = vld [vmem:[%s2426_s5 + $0xa70] sm:$0xff] }
 0x127   : > { %1472 = vst [vmem:[%s2538_s19 + $0xf8] sm:$0xff] %v960_v12  ;;  %v1055_v12 = vadd.f32 %v807_v41, %v351_v5  ;;  %v1037_v41 = vadd.f32 %v802_v10, %v333_v34  ;;  %v1038_v42 = vadd.f32 %v802_v10, %v334_v36  ;;  %v558_v5 = vld [vmem:[%s2426_s5 + $0xa68] sm:$0xff]  ;;  %v396_v34 = vld [vmem:[%s2426_s5 + $0x558] sm:$0xff]  ;;  %v397_v36 = vld [vmem:[%s2426_s5 + $0x560] sm:$0xff] }
 0x128   : > { %1713 = vst [vmem:[%s2538_s19 + $0x880] sm:$0xff] %v1201_v15  ;;  %v323_v15 = vld [vmem:[%s2426_s5 + $0x310] sm:$0xff] }
 0x129   : > { %1714 = vst [vmem:[%s2538_s19 + $0x888] sm:$0xff] %v1202_v17  ;;  %v1025_v17 = vadd.f32 %v802_v10, %v321_v11 }
 0x12a   : > { %1715 = vst [vmem:[%s2538_s19 + $0x890] sm:$0xff] %v1203_v19  ;;  %v1026_v19 = vadd.f32 %v802_v10, %v322_v13  ;;  %v385_v13 = vld [vmem:[%s2426_s5 + $0x500] sm:$0xff] }
 0x12b   : > { %1716 = vst [vmem:[%s2538_s19 + $0x898] sm:$0xff] %v1204_v21  ;;  %v1027_v21 = vadd.f32 %v802_v10, %v323_v15  ;;  %v386_v15 = vld [vmem:[%s2426_s5 + $0x508] sm:$0xff] }
 0x12c   : > { %1717 = vst [vmem:[%s2538_s19 + $0x8a0] sm:$0xff] %v1205_v23  ;;  %v1028_v23 = vadd.f32 %v802_v10, %v324_v16 }
 0x12d   : > { %1718 = vst [vmem:[%s2538_s19 + $0x8a8] sm:$0xff] %v1206_v25  ;;  %v1029_v25 = vadd.f32 %v802_v10, %v325_v18  ;;  %v388_v18 = vld [vmem:[%s2426_s5 + $0x518] sm:$0xff] }
 0x12e   : > { %1719 = vst [vmem:[%s2538_s19 + $0x8b0] sm:$0xff] %v1207_v27  ;;  %v1030_v27 = vadd.f32 %v802_v10, %v326_v20  ;;  %v389_v20 = vld [vmem:[%s2426_s5 + $0x520] sm:$0xff] }
 0x12f   : > { %1720 = vst [vmem:[%s2538_s19 + $0x8b8] sm:$0xff] %v1208_v29  ;;  %v1031_v29 = vadd.f32 %v802_v10, %v327_v22  ;;  %v390_v22 = vld [vmem:[%s2426_s5 + $0x528] sm:$0xff] }
 0x130   : > { %1721 = vst [vmem:[%s2538_s19 + $0x8c0] sm:$0xff] %v1209_v31  ;;  %v1032_v31 = vadd.f32 %v802_v10, %v328_v24  ;;  %v391_v24 = vld [vmem:[%s2426_s5 + $0x530] sm:$0xff] }
 0x131   : > { %1722 = vst [vmem:[%s2538_s19 + $0x8c8] sm:$0xff] %v1210_v33  ;;  %v1033_v33 = vadd.f32 %v802_v10, %v329_v26  ;;  %v392_v26 = vld [vmem:[%s2426_s5 + $0x538] sm:$0xff] }
 0x132   : > { %1723 = vst [vmem:[%s2538_s19 + $0x8d0] sm:$0xff] %v1211_v35  ;;  %v1034_v35 = vadd.f32 %v802_v10, %v330_v28  ;;  %v393_v28 = vld [vmem:[%s2426_s5 + $0x540] sm:$0xff] }
 0x133   : > { %1724 = vst [vmem:[%s2538_s19 + $0x8d8] sm:$0xff] %v1212_v37  ;;  %v1035_v37 = vadd.f32 %v802_v10, %v331_v30  ;;  %v394_v30 = vld [vmem:[%s2426_s5 + $0x548] sm:$0xff] }
 0x134   : > { %1725 = vst [vmem:[%s2538_s19 + $0x8e0] sm:$0xff] %v1213_v39  ;;  %v1036_v39 = vadd.f32 %v802_v10, %v332_v32  ;;  %v395_v32 = vld [vmem:[%s2426_s5 + $0x550] sm:$0xff] }
 0x135   : > { %1726 = vst [vmem:[%s2538_s19 + $0x8e8] sm:$0xff] %v1214_v40  ;;  %v336_v40 = vld [vmem:[%s2426_s5 + $0x378] sm:$0xff] }
 0x136   : > { %1727 = vst [vmem:[%s2538_s19 + $0x8f0] sm:$0xff] %v1215_v43  ;;  %v872_v43 = vpop.permute.xlu2 %871  ;;  %v1040_v47 = vadd.f32 %v802_v10, %v336_v40  ;;  %v399_v40 = vld [vmem:[%s2426_s5 + $0x570] sm:$0xff] }
 0x137   : > { %1728 = vst [vmem:[%s2538_s19 + $0x8f8] sm:$0xff] %v1216_v45  ;;  %v1039_v45 = vadd.f32 %v802_v10, %v335_v38  ;;  %v1261_v10 = vadd.f32 %v872_v43, %v557_v3  ;;  %v1262_v11 = vadd.f32 %v872_v43, %v558_v5  ;;  %v398_v38 = vld [vmem:[%s2426_s5 + $0x568] sm:$0xff]  ;;  %v380_v3 = vld [vmem:[%s2426_s5 + $0x4d8] sm:$0xff]  ;;  %v381_v5 = vld [vmem:[%s2426_s5 + $0x4e0] sm:$0xff] }
 0x138   : > { %1553 = vst [vmem:[%s2538_s19 + $0x380] sm:$0xff] %v1041_v48  ;;  %v547_v48 = vld [vmem:[%s2426_s5 + $0xa10] sm:$0xff] }
 0x139   : > { %1554 = vst [vmem:[%s2538_s19 + $0x388] sm:$0xff] %v1042_v50  ;;  %v1249_v50 = vadd.f32 %v872_v43, %v545_v44 }
 0x13a   : > { %1555 = vst [vmem:[%s2538_s19 + $0x390] sm:$0xff] %v1043_v52  ;;  %v1250_v52 = vadd.f32 %v872_v43, %v546_v46  ;;  %v369_v46 = vld [vmem:[%s2426_s5 + $0x480] sm:$0xff] }
 0x13b   : > { %1556 = vst [vmem:[%s2538_s19 + $0x398] sm:$0xff] %v1044_v54  ;;  %v1251_v54 = vadd.f32 %v872_v43, %v547_v48  ;;  %v370_v48 = vld [vmem:[%s2426_s5 + $0x488] sm:$0xff] }
 0x13c   : > { %1557 = vst [vmem:[%s2538_s19 + $0x3a0] sm:$0xff] %v1045_v56  ;;  %v1252_v56 = vadd.f32 %v872_v43, %v548_v49 }
 0x13d   : > { %1558 = vst [vmem:[%s2538_s19 + $0x3a8] sm:$0xff] %v1046_v58  ;;  %v1253_v58 = vadd.f32 %v872_v43, %v549_v51  ;;  %v372_v51 = vld [vmem:[%s2426_s5 + $0x498] sm:$0xff] }
 0x13e   : > { %1559 = vst [vmem:[%s2538_s19 + $0x3b0] sm:$0xff] %v1047_v60  ;;  %v1254_v60 = vadd.f32 %v872_v43, %v550_v53  ;;  %v373_v53 = vld [vmem:[%s2426_s5 + $0x4a0] sm:$0xff] }
 0x13f   : > { %1560 = vst [vmem:[%s2538_s19 + $0x3b8] sm:$0xff] %v1048_v62  ;;  %v1255_v62 = vadd.f32 %v872_v43, %v551_v55  ;;  %v374_v55 = vld [vmem:[%s2426_s5 + $0x4a8] sm:$0xff] }
 0x140   : > { %1561 = vst [vmem:[%s2538_s19 + $0x3c0] sm:$0xff] %v1049_v0  ;;  %v1256_v0 = vadd.f32 %v872_v43, %v552_v57  ;;  %v375_v57 = vld [vmem:[%s2426_s5 + $0x4b0] sm:$0xff] }
 0x141   : > { %1562 = vst [vmem:[%s2538_s19 + $0x3c8] sm:$0xff] %v1050_v2  ;;  %v1257_v2 = vadd.f32 %v872_v43, %v553_v59  ;;  %v376_v59 = vld [vmem:[%s2426_s5 + $0x4b8] sm:$0xff] }
 0x142   : > { %1563 = vst [vmem:[%s2538_s19 + $0x3d0] sm:$0xff] %v1051_v4  ;;  %v1258_v4 = vadd.f32 %v872_v43, %v554_v61  ;;  %v377_v61 = vld [vmem:[%s2426_s5 + $0x4c0] sm:$0xff] }
 0x143   : > { %1564 = vst [vmem:[%s2538_s19 + $0x3d8] sm:$0xff] %v1052_v6  ;;  %v1259_v6 = vadd.f32 %v872_v43, %v555_v63  ;;  %v378_v63 = vld [vmem:[%s2426_s5 + $0x4c8] sm:$0xff] }
 0x144   : > { %1565 = vst [vmem:[%s2538_s19 + $0x3e0] sm:$0xff] %v1053_v8  ;;  %v1260_v8 = vadd.f32 %v872_v43, %v556_v1  ;;  %v379_v1 = vld [vmem:[%s2426_s5 + $0x4d0] sm:$0xff] }
 0x145   : > { %1566 = vst [vmem:[%s2538_s19 + $0x3e8] sm:$0xff] %v1054_v9  ;;  %v560_v9 = vld [vmem:[%s2426_s5 + $0xa78] sm:$0xff] }
 0x146   : > { %1567 = vst [vmem:[%s2538_s19 + $0x3f0] sm:$0xff] %v1055_v12  ;;  %v822_v12 = vpop.permute.xlu1 %821  ;;  %v1264_v16 = vadd.f32 %v872_v43, %v560_v9  ;;  %v383_v9 = vld [vmem:[%s2426_s5 + $0x4f0] sm:$0xff] }
 0x147   : > { %1568 = vst [vmem:[%s2538_s19 + $0x3f8] sm:$0xff] %v1056_v14  ;;  %v1263_v14 = vadd.f32 %v872_v43, %v559_v7  ;;  %v1101_v43 = vadd.f32 %v822_v12, %v397_v36  ;;  %v1102_v44 = vadd.f32 %v822_v12, %v398_v38  ;;  %v382_v7 = vld [vmem:[%s2426_s5 + $0x4e8] sm:$0xff]  ;;  %v604_v36 = vld [vmem:[%s2426_s5 + $0xbd8] sm:$0xff]  ;;  %v605_v38 = vld [vmem:[%s2426_s5 + $0xbe0] sm:$0xff] }
 0x148   : > { %1537 = vst [vmem:[%s2538_s19 + $0x300] sm:$0xff] %v1025_v17  ;;  %v387_v17 = vld [vmem:[%s2426_s5 + $0x510] sm:$0xff] }
 0x149   : > { %1538 = vst [vmem:[%s2538_s19 + $0x308] sm:$0xff] %v1026_v19  ;;  %v1089_v19 = vadd.f32 %v822_v12, %v385_v13 }
 0x14a   : > { %1539 = vst [vmem:[%s2538_s19 + $0x310] sm:$0xff] %v1027_v21  ;;  %v1090_v21 = vadd.f32 %v822_v12, %v386_v15  ;;  %v593_v15 = vld [vmem:[%s2426_s5 + $0xb80] sm:$0xff] }
 0x14b   : > { %1540 = vst [vmem:[%s2538_s19 + $0x318] sm:$0xff] %v1028_v23  ;;  %v1091_v23 = vadd.f32 %v822_v12, %v387_v17  ;;  %v594_v17 = vld [vmem:[%s2426_s5 + $0xb88] sm:$0xff] }
 0x14c   : > { %1541 = vst [vmem:[%s2538_s19 + $0x320] sm:$0xff] %v1029_v25  ;;  %v1092_v25 = vadd.f32 %v822_v12, %v388_v18 }
 0x14d   : > { %1542 = vst [vmem:[%s2538_s19 + $0x328] sm:$0xff] %v1030_v27  ;;  %v1093_v27 = vadd.f32 %v822_v12, %v389_v20  ;;  %v596_v20 = vld [vmem:[%s2426_s5 + $0xb98] sm:$0xff] }
 0x14e   : > { %1543 = vst [vmem:[%s2538_s19 + $0x330] sm:$0xff] %v1031_v29  ;;  %v1094_v29 = vadd.f32 %v822_v12, %v390_v22  ;;  %v597_v22 = vld [vmem:[%s2426_s5 + $0xba0] sm:$0xff] }
 0x14f   : > { %1544 = vst [vmem:[%s2538_s19 + $0x338] sm:$0xff] %v1032_v31  ;;  %v1095_v31 = vadd.f32 %v822_v12, %v391_v24  ;;  %v598_v24 = vld [vmem:[%s2426_s5 + $0xba8] sm:$0xff] }
 0x150   : > { %1545 = vst [vmem:[%s2538_s19 + $0x340] sm:$0xff] %v1033_v33  ;;  %v1096_v33 = vadd.f32 %v822_v12, %v392_v26  ;;  %v599_v26 = vld [vmem:[%s2426_s5 + $0xbb0] sm:$0xff] }
 0x151   : > { %1546 = vst [vmem:[%s2538_s19 + $0x348] sm:$0xff] %v1034_v35  ;;  %v1097_v35 = vadd.f32 %v822_v12, %v393_v28  ;;  %v600_v28 = vld [vmem:[%s2426_s5 + $0xbb8] sm:$0xff] }
 0x152   : > { %1547 = vst [vmem:[%s2538_s19 + $0x350] sm:$0xff] %v1035_v37  ;;  %v1098_v37 = vadd.f32 %v822_v12, %v394_v30  ;;  %v601_v30 = vld [vmem:[%s2426_s5 + $0xbc0] sm:$0xff] }
 0x153   : > { %1548 = vst [vmem:[%s2538_s19 + $0x358] sm:$0xff] %v1036_v39  ;;  %v1099_v39 = vadd.f32 %v822_v12, %v395_v32  ;;  %v602_v32 = vld [vmem:[%s2426_s5 + $0xbc8] sm:$0xff] }
 0x154   : > { %1549 = vst [vmem:[%s2538_s19 + $0x360] sm:$0xff] %v1037_v41  ;;  %v1100_v41 = vadd.f32 %v822_v12, %v396_v34  ;;  %v603_v34 = vld [vmem:[%s2426_s5 + $0xbd0] sm:$0xff] }
 0x155   : > { %1550 = vst [vmem:[%s2538_s19 + $0x368] sm:$0xff] %v1038_v42  ;;  %v400_v42 = vld [vmem:[%s2426_s5 + $0x578] sm:$0xff] }
 0x156   : > { %1551 = vst [vmem:[%s2538_s19 + $0x370] sm:$0xff] %v1039_v45  ;;  %v817_v45 = vpop.permute.xlu0 %816  ;;  %v1104_v49 = vadd.f32 %v822_v12, %v400_v42  ;;  %v607_v42 = vld [vmem:[%s2426_s5 + $0xbf0] sm:$0xff] }
 0x157   : > { %1552 = vst [vmem:[%s2538_s19 + $0x378] sm:$0xff] %v1040_v47  ;;  %v1103_v47 = vadd.f32 %v822_v12, %v399_v40  ;;  %v1085_v12 = vadd.f32 %v817_v45, %v381_v5  ;;  %v1086_v13 = vadd.f32 %v817_v45, %v382_v7  ;;  %v606_v40 = vld [vmem:[%s2426_s5 + $0xbe8] sm:$0xff]  ;;  %v444_v5 = vld [vmem:[%s2426_s5 + $0x6d8] sm:$0xff]  ;;  %v445_v7 = vld [vmem:[%s2426_s5 + $0x6e0] sm:$0xff] }
 0x158   : > { %1761 = vst [vmem:[%s2538_s19 + $0xa00] sm:$0xff] %v1249_v50  ;;  %v371_v50 = vld [vmem:[%s2426_s5 + $0x490] sm:$0xff] }
 0x159   : > { %1762 = vst [vmem:[%s2538_s19 + $0xa08] sm:$0xff] %v1250_v52  ;;  %v1073_v52 = vadd.f32 %v817_v45, %v369_v46 }
 0x15a   : > { %1763 = vst [vmem:[%s2538_s19 + $0xa10] sm:$0xff] %v1251_v54  ;;  %v1074_v54 = vadd.f32 %v817_v45, %v370_v48  ;;  %v433_v48 = vld [vmem:[%s2426_s5 + $0x680] sm:$0xff] }
 0x15b   : > { %1764 = vst [vmem:[%s2538_s19 + $0xa18] sm:$0xff] %v1252_v56  ;;  %v1075_v56 = vadd.f32 %v817_v45, %v371_v50  ;;  %v434_v50 = vld [vmem:[%s2426_s5 + $0x688] sm:$0xff] }
 0x15c   : > { %1765 = vst [vmem:[%s2538_s19 + $0xa20] sm:$0xff] %v1253_v58  ;;  %v1076_v58 = vadd.f32 %v817_v45, %v372_v51 }
 0x15d   : > { %1766 = vst [vmem:[%s2538_s19 + $0xa28] sm:$0xff] %v1254_v60  ;;  %v1077_v60 = vadd.f32 %v817_v45, %v373_v53  ;;  %v436_v53 = vld [vmem:[%s2426_s5 + $0x698] sm:$0xff] }
 0x15e   : > { %1767 = vst [vmem:[%s2538_s19 + $0xa30] sm:$0xff] %v1255_v62  ;;  %v1078_v62 = vadd.f32 %v817_v45, %v374_v55  ;;  %v437_v55 = vld [vmem:[%s2426_s5 + $0x6a0] sm:$0xff] }
 0x15f   : > { %1768 = vst [vmem:[%s2538_s19 + $0xa38] sm:$0xff] %v1256_v0  ;;  %v1079_v0 = vadd.f32 %v817_v45, %v375_v57  ;;  %v438_v57 = vld [vmem:[%s2426_s5 + $0x6a8] sm:$0xff] }
 0x160   : > { %1769 = vst [vmem:[%s2538_s19 + $0xa40] sm:$0xff] %v1257_v2  ;;  %v1080_v2 = vadd.f32 %v817_v45, %v376_v59  ;;  %v439_v59 = vld [vmem:[%s2426_s5 + $0x6b0] sm:$0xff] }
 0x161   : > { %1770 = vst [vmem:[%s2538_s19 + $0xa48] sm:$0xff] %v1258_v4  ;;  %v1081_v4 = vadd.f32 %v817_v45, %v377_v61  ;;  %v440_v61 = vld [vmem:[%s2426_s5 + $0x6b8] sm:$0xff] }
 0x162   : > { %1771 = vst [vmem:[%s2538_s19 + $0xa50] sm:$0xff] %v1259_v6  ;;  %v1082_v6 = vadd.f32 %v817_v45, %v378_v63  ;;  %v441_v63 = vld [vmem:[%s2426_s5 + $0x6c0] sm:$0xff] }
 0x163   : > { %1772 = vst [vmem:[%s2538_s19 + $0xa58] sm:$0xff] %v1260_v8  ;;  %v1083_v8 = vadd.f32 %v817_v45, %v379_v1  ;;  %v442_v1 = vld [vmem:[%s2426_s5 + $0x6c8] sm:$0xff] }
 0x164   : > { %1773 = vst [vmem:[%s2538_s19 + $0xa60] sm:$0xff] %v1261_v10  ;;  %v1084_v10 = vadd.f32 %v817_v45, %v380_v3  ;;  %v443_v3 = vld [vmem:[%s2426_s5 + $0x6d0] sm:$0xff] }
 0x165   : > { %1774 = vst [vmem:[%s2538_s19 + $0xa68] sm:$0xff] %v1262_v11  ;;  %v384_v11 = vld [vmem:[%s2426_s5 + $0x4f8] sm:$0xff] }
 0x166   : > { %1775 = vst [vmem:[%s2538_s19 + $0xa70] sm:$0xff] %v1263_v14  ;;  %v887_v14 = vpop.permute.xlu2 %886  ;;  %v1088_v18 = vadd.f32 %v817_v45, %v384_v11  ;;  %v447_v11 = vld [vmem:[%s2426_s5 + $0x6f0] sm:$0xff] }
 0x167   : > { %1776 = vst [vmem:[%s2538_s19 + $0xa78] sm:$0xff] %v1264_v16  ;;  %v1087_v16 = vadd.f32 %v817_v45, %v383_v9  ;;  %v1309_v45 = vadd.f32 %v887_v14, %v605_v38  ;;  %v1310_v46 = vadd.f32 %v887_v14, %v606_v40  ;;  %v446_v9 = vld [vmem:[%s2426_s5 + $0x6e8] sm:$0xff]  ;;  %v428_v38 = vld [vmem:[%s2426_s5 + $0x658] sm:$0xff]  ;;  %v429_v40 = vld [vmem:[%s2426_s5 + $0x660] sm:$0xff] }
 0x168   : > { %1601 = vst [vmem:[%s2538_s19 + $0x500] sm:$0xff] %v1089_v19  ;;  %v595_v19 = vld [vmem:[%s2426_s5 + $0xb90] sm:$0xff] }
 0x169   : > { %1602 = vst [vmem:[%s2538_s19 + $0x508] sm:$0xff] %v1090_v21  ;;  %v1297_v21 = vadd.f32 %v887_v14, %v593_v15 }
 0x16a   : > { %1603 = vst [vmem:[%s2538_s19 + $0x510] sm:$0xff] %v1091_v23  ;;  %v1298_v23 = vadd.f32 %v887_v14, %v594_v17  ;;  %v417_v17 = vld [vmem:[%s2426_s5 + $0x600] sm:$0xff] }
 0x16b   : > { %1604 = vst [vmem:[%s2538_s19 + $0x518] sm:$0xff] %v1092_v25  ;;  %v1299_v25 = vadd.f32 %v887_v14, %v595_v19  ;;  %v418_v19 = vld [vmem:[%s2426_s5 + $0x608] sm:$0xff] }
 0x16c   : > { %1605 = vst [vmem:[%s2538_s19 + $0x520] sm:$0xff] %v1093_v27  ;;  %v1300_v27 = vadd.f32 %v887_v14, %v596_v20 }
 0x16d   : > { %1606 = vst [vmem:[%s2538_s19 + $0x528] sm:$0xff] %v1094_v29  ;;  %v1301_v29 = vadd.f32 %v887_v14, %v597_v22  ;;  %v420_v22 = vld [vmem:[%s2426_s5 + $0x618] sm:$0xff] }
 0x16e   : > { %1607 = vst [vmem:[%s2538_s19 + $0x530] sm:$0xff] %v1095_v31  ;;  %v1302_v31 = vadd.f32 %v887_v14, %v598_v24  ;;  %v421_v24 = vld [vmem:[%s2426_s5 + $0x620] sm:$0xff] }
 0x16f   : > { %1608 = vst [vmem:[%s2538_s19 + $0x538] sm:$0xff] %v1096_v33  ;;  %v1303_v33 = vadd.f32 %v887_v14, %v599_v26  ;;  %v422_v26 = vld [vmem:[%s2426_s5 + $0x628] sm:$0xff] }
 0x170   : > { %1609 = vst [vmem:[%s2538_s19 + $0x540] sm:$0xff] %v1097_v35  ;;  %v1304_v35 = vadd.f32 %v887_v14, %v600_v28  ;;  %v423_v28 = vld [vmem:[%s2426_s5 + $0x630] sm:$0xff] }
 0x171   : > { %1610 = vst [vmem:[%s2538_s19 + $0x548] sm:$0xff] %v1098_v37  ;;  %v1305_v37 = vadd.f32 %v887_v14, %v601_v30  ;;  %v424_v30 = vld [vmem:[%s2426_s5 + $0x638] sm:$0xff] }
 0x172   : > { %1611 = vst [vmem:[%s2538_s19 + $0x550] sm:$0xff] %v1099_v39  ;;  %v1306_v39 = vadd.f32 %v887_v14, %v602_v32  ;;  %v425_v32 = vld [vmem:[%s2426_s5 + $0x640] sm:$0xff] }
 0x173   : > { %1612 = vst [vmem:[%s2538_s19 + $0x558] sm:$0xff] %v1100_v41  ;;  %v1307_v41 = vadd.f32 %v887_v14, %v603_v34  ;;  %v426_v34 = vld [vmem:[%s2426_s5 + $0x648] sm:$0xff] }
 0x174   : > { %1613 = vst [vmem:[%s2538_s19 + $0x560] sm:$0xff] %v1101_v43  ;;  %v1308_v43 = vadd.f32 %v887_v14, %v604_v36  ;;  %v427_v36 = vld [vmem:[%s2426_s5 + $0x650] sm:$0xff] }
 0x175   : > { %1614 = vst [vmem:[%s2538_s19 + $0x568] sm:$0xff] %v1102_v44  ;;  %v608_v44 = vld [vmem:[%s2426_s5 + $0xbf8] sm:$0xff] }
 0x176   : > { %1615 = vst [vmem:[%s2538_s19 + $0x570] sm:$0xff] %v1103_v47  ;;  %v837_v47 = vpop.permute.xlu1 %836  ;;  %v1312_v51 = vadd.f32 %v887_v14, %v608_v44  ;;  %v431_v44 = vld [vmem:[%s2426_s5 + $0x670] sm:$0xff] }
 0x177   : > { %1616 = vst [vmem:[%s2538_s19 + $0x578] sm:$0xff] %v1104_v49  ;;  %v1311_v49 = vadd.f32 %v887_v14, %v607_v42  ;;  %v1149_v14 = vadd.f32 %v837_v47, %v445_v7  ;;  %v1150_v15 = vadd.f32 %v837_v47, %v446_v9  ;;  %v430_v42 = vld [vmem:[%s2426_s5 + $0x668] sm:$0xff]  ;;  %v652_v7 = vld [vmem:[%s2426_s5 + $0xd58] sm:$0xff]  ;;  %v653_v9 = vld [vmem:[%s2426_s5 + $0xd60] sm:$0xff] }
 0x178   : > { %1585 = vst [vmem:[%s2538_s19 + $0x480] sm:$0xff] %v1073_v52  ;;  %v435_v52 = vld [vmem:[%s2426_s5 + $0x690] sm:$0xff] }
 0x179   : > { %1586 = vst [vmem:[%s2538_s19 + $0x488] sm:$0xff] %v1074_v54  ;;  %v1137_v54 = vadd.f32 %v837_v47, %v433_v48 }
 0x17a   : > { %1587 = vst [vmem:[%s2538_s19 + $0x490] sm:$0xff] %v1075_v56  ;;  %v1138_v56 = vadd.f32 %v837_v47, %v434_v50  ;;  %v641_v50 = vld [vmem:[%s2426_s5 + $0xd00] sm:$0xff] }
 0x17b   : > { %1588 = vst [vmem:[%s2538_s19 + $0x498] sm:$0xff] %v1076_v58  ;;  %v1139_v58 = vadd.f32 %v837_v47, %v435_v52  ;;  %v642_v52 = vld [vmem:[%s2426_s5 + $0xd08] sm:$0xff] }
 0x17c   : > { %1589 = vst [vmem:[%s2538_s19 + $0x4a0] sm:$0xff] %v1077_v60  ;;  %v1140_v60 = vadd.f32 %v837_v47, %v436_v53 }
 0x17d   : > { %1590 = vst [vmem:[%s2538_s19 + $0x4a8] sm:$0xff] %v1078_v62  ;;  %v1141_v62 = vadd.f32 %v837_v47, %v437_v55  ;;  %v644_v55 = vld [vmem:[%s2426_s5 + $0xd18] sm:$0xff] }
 0x17e   : > { %1591 = vst [vmem:[%s2538_s19 + $0x4b0] sm:$0xff] %v1079_v0  ;;  %v1142_v0 = vadd.f32 %v837_v47, %v438_v57  ;;  %v645_v57 = vld [vmem:[%s2426_s5 + $0xd20] sm:$0xff] }
 0x17f   : > { %1592 = vst [vmem:[%s2538_s19 + $0x4b8] sm:$0xff] %v1080_v2  ;;  %v1143_v2 = vadd.f32 %v837_v47, %v439_v59  ;;  %v646_v59 = vld [vmem:[%s2426_s5 + $0xd28] sm:$0xff] }
 0x180   : > { %1593 = vst [vmem:[%s2538_s19 + $0x4c0] sm:$0xff] %v1081_v4  ;;  %v1144_v4 = vadd.f32 %v837_v47, %v440_v61  ;;  %v647_v61 = vld [vmem:[%s2426_s5 + $0xd30] sm:$0xff] }
 0x181   : > { %1594 = vst [vmem:[%s2538_s19 + $0x4c8] sm:$0xff] %v1082_v6  ;;  %v1145_v6 = vadd.f32 %v837_v47, %v441_v63  ;;  %v648_v63 = vld [vmem:[%s2426_s5 + $0xd38] sm:$0xff] }
 0x182   : > { %1595 = vst [vmem:[%s2538_s19 + $0x4d0] sm:$0xff] %v1083_v8  ;;  %v1146_v8 = vadd.f32 %v837_v47, %v442_v1  ;;  %v649_v1 = vld [vmem:[%s2426_s5 + $0xd40] sm:$0xff] }
 0x183   : > { %1596 = vst [vmem:[%s2538_s19 + $0x4d8] sm:$0xff] %v1084_v10  ;;  %v1147_v10 = vadd.f32 %v837_v47, %v443_v3  ;;  %v650_v3 = vld [vmem:[%s2426_s5 + $0xd48] sm:$0xff] }
 0x184   : > { %1597 = vst [vmem:[%s2538_s19 + $0x4e0] sm:$0xff] %v1085_v12  ;;  %v1148_v12 = vadd.f32 %v837_v47, %v444_v5  ;;  %v651_v5 = vld [vmem:[%s2426_s5 + $0xd50] sm:$0xff] }
 0x185   : > { %1598 = vst [vmem:[%s2538_s19 + $0x4e8] sm:$0xff] %v1086_v13  ;;  %v448_v13 = vld [vmem:[%s2426_s5 + $0x6f8] sm:$0xff] }
 0x186   : > { %1599 = vst [vmem:[%s2538_s19 + $0x4f0] sm:$0xff] %v1087_v16  ;;  %v832_v16 = vpop.permute.xlu0 %831  ;;  %v1152_v20 = vadd.f32 %v837_v47, %v448_v13  ;;  %v655_v13 = vld [vmem:[%s2426_s5 + $0xd70] sm:$0xff] }
 0x187   : > { %1600 = vst [vmem:[%s2538_s19 + $0x4f8] sm:$0xff] %v1088_v18  ;;  %v1151_v18 = vadd.f32 %v837_v47, %v447_v11  ;;  %v1133_v47 = vadd.f32 %v832_v16, %v429_v40  ;;  %v1134_v48 = vadd.f32 %v832_v16, %v430_v42  ;;  %v654_v11 = vld [vmem:[%s2426_s5 + $0xd68] sm:$0xff]  ;;  %v492_v40 = vld [vmem:[%s2426_s5 + $0x858] sm:$0xff]  ;;  %v493_v42 = vld [vmem:[%s2426_s5 + $0x860] sm:$0xff] }
 0x188   : > { %1809 = vst [vmem:[%s2538_s19 + $0xb80] sm:$0xff] %v1297_v21  ;;  %v419_v21 = vld [vmem:[%s2426_s5 + $0x610] sm:$0xff] }
 0x189   : > { %1810 = vst [vmem:[%s2538_s19 + $0xb88] sm:$0xff] %v1298_v23  ;;  %v1121_v23 = vadd.f32 %v832_v16, %v417_v17 }
 0x18a   : > { %1811 = vst [vmem:[%s2538_s19 + $0xb90] sm:$0xff] %v1299_v25  ;;  %v1122_v25 = vadd.f32 %v832_v16, %v418_v19  ;;  %v481_v19 = vld [vmem:[%s2426_s5 + $0x800] sm:$0xff] }
 0x18b   : > { %1812 = vst [vmem:[%s2538_s19 + $0xb98] sm:$0xff] %v1300_v27  ;;  %v1123_v27 = vadd.f32 %v832_v16, %v419_v21  ;;  %v482_v21 = vld [vmem:[%s2426_s5 + $0x808] sm:$0xff] }
 0x18c   : > { %1813 = vst [vmem:[%s2538_s19 + $0xba0] sm:$0xff] %v1301_v29  ;;  %v1124_v29 = vadd.f32 %v832_v16, %v420_v22 }
 0x18d   : > { %1814 = vst [vmem:[%s2538_s19 + $0xba8] sm:$0xff] %v1302_v31  ;;  %v1125_v31 = vadd.f32 %v832_v16, %v421_v24  ;;  %v484_v24 = vld [vmem:[%s2426_s5 + $0x818] sm:$0xff] }
 0x18e   : > { %1815 = vst [vmem:[%s2538_s19 + $0xbb0] sm:$0xff] %v1303_v33  ;;  %v1126_v33 = vadd.f32 %v832_v16, %v422_v26  ;;  %v485_v26 = vld [vmem:[%s2426_s5 + $0x820] sm:$0xff] }
 0x18f   : > { %1816 = vst [vmem:[%s2538_s19 + $0xbb8] sm:$0xff] %v1304_v35  ;;  %v1127_v35 = vadd.f32 %v832_v16, %v423_v28  ;;  %v486_v28 = vld [vmem:[%s2426_s5 + $0x828] sm:$0xff] }
 0x190   : > { %1817 = vst [vmem:[%s2538_s19 + $0xbc0] sm:$0xff] %v1305_v37  ;;  %v1128_v37 = vadd.f32 %v832_v16, %v424_v30  ;;  %v487_v30 = vld [vmem:[%s2426_s5 + $0x830] sm:$0xff] }
 0x191   : > { %1818 = vst [vmem:[%s2538_s19 + $0xbc8] sm:$0xff] %v1306_v39  ;;  %v1129_v39 = vadd.f32 %v832_v16, %v425_v32  ;;  %v488_v32 = vld [vmem:[%s2426_s5 + $0x838] sm:$0xff] }
 0x192   : > { %1819 = vst [vmem:[%s2538_s19 + $0xbd0] sm:$0xff] %v1307_v41  ;;  %v1130_v41 = vadd.f32 %v832_v16, %v426_v34  ;;  %v489_v34 = vld [vmem:[%s2426_s5 + $0x840] sm:$0xff] }
 0x193   : > { %1820 = vst [vmem:[%s2538_s19 + $0xbd8] sm:$0xff] %v1308_v43  ;;  %v1131_v43 = vadd.f32 %v832_v16, %v427_v36  ;;  %v490_v36 = vld [vmem:[%s2426_s5 + $0x848] sm:$0xff] }
 0x194   : > { %1821 = vst [vmem:[%s2538_s19 + $0xbe0] sm:$0xff] %v1309_v45  ;;  %v1132_v45 = vadd.f32 %v832_v16, %v428_v38  ;;  %v491_v38 = vld [vmem:[%s2426_s5 + $0x850] sm:$0xff] }
 0x195   : > { %1822 = vst [vmem:[%s2538_s19 + $0xbe8] sm:$0xff] %v1310_v46  ;;  %v432_v46 = vld [vmem:[%s2426_s5 + $0x678] sm:$0xff] }
 0x196   : > { %1823 = vst [vmem:[%s2538_s19 + $0xbf0] sm:$0xff] %v1311_v49  ;;  %v902_v49 = vpop.permute.xlu2 %901  ;;  %v1136_v53 = vadd.f32 %v832_v16, %v432_v46  ;;  %v495_v46 = vld [vmem:[%s2426_s5 + $0x870] sm:$0xff] }
 0x197   : > { %1824 = vst [vmem:[%s2538_s19 + $0xbf8] sm:$0xff] %v1312_v51  ;;  %v1135_v51 = vadd.f32 %v832_v16, %v431_v44  ;;  %v1357_v16 = vadd.f32 %v902_v49, %v653_v9  ;;  %v1358_v17 = vadd.f32 %v902_v49, %v654_v11  ;;  %v494_v44 = vld [vmem:[%s2426_s5 + $0x868] sm:$0xff]  ;;  %v476_v9 = vld [vmem:[%s2426_s5 + $0x7d8] sm:$0xff]  ;;  %v477_v11 = vld [vmem:[%s2426_s5 + $0x7e0] sm:$0xff] }
 0x198   : > { %1649 = vst [vmem:[%s2538_s19 + $0x680] sm:$0xff] %v1137_v54  ;;  %v643_v54 = vld [vmem:[%s2426_s5 + $0xd10] sm:$0xff] }
 0x199   : > { %1650 = vst [vmem:[%s2538_s19 + $0x688] sm:$0xff] %v1138_v56  ;;  %v1345_v56 = vadd.f32 %v902_v49, %v641_v50 }
 0x19a   : > { %1651 = vst [vmem:[%s2538_s19 + $0x690] sm:$0xff] %v1139_v58  ;;  %v1346_v58 = vadd.f32 %v902_v49, %v642_v52  ;;  %v465_v52 = vld [vmem:[%s2426_s5 + $0x780] sm:$0xff] }
 0x19b   : > { %1652 = vst [vmem:[%s2538_s19 + $0x698] sm:$0xff] %v1140_v60  ;;  %v1347_v60 = vadd.f32 %v902_v49, %v643_v54  ;;  %v466_v54 = vld [vmem:[%s2426_s5 + $0x788] sm:$0xff] }
 0x19c   : > { %1653 = vst [vmem:[%s2538_s19 + $0x6a0] sm:$0xff] %v1141_v62  ;;  %v1348_v62 = vadd.f32 %v902_v49, %v644_v55 }
 0x19d   : > { %1654 = vst [vmem:[%s2538_s19 + $0x6a8] sm:$0xff] %v1142_v0  ;;  %v1349_v0 = vadd.f32 %v902_v49, %v645_v57  ;;  %v468_v57 = vld [vmem:[%s2426_s5 + $0x798] sm:$0xff] }
 0x19e   : > { %1655 = vst [vmem:[%s2538_s19 + $0x6b0] sm:$0xff] %v1143_v2  ;;  %v1350_v2 = vadd.f32 %v902_v49, %v646_v59  ;;  %v469_v59 = vld [vmem:[%s2426_s5 + $0x7a0] sm:$0xff] }
 0x19f   : > { %1656 = vst [vmem:[%s2538_s19 + $0x6b8] sm:$0xff] %v1144_v4  ;;  %v1351_v4 = vadd.f32 %v902_v49, %v647_v61  ;;  %v470_v61 = vld [vmem:[%s2426_s5 + $0x7a8] sm:$0xff] }
 0x1a0   : > { %1657 = vst [vmem:[%s2538_s19 + $0x6c0] sm:$0xff] %v1145_v6  ;;  %v1352_v6 = vadd.f32 %v902_v49, %v648_v63  ;;  %v471_v63 = vld [vmem:[%s2426_s5 + $0x7b0] sm:$0xff] }
 0x1a1   : > { %1658 = vst [vmem:[%s2538_s19 + $0x6c8] sm:$0xff] %v1146_v8  ;;  %v1353_v8 = vadd.f32 %v902_v49, %v649_v1  ;;  %v472_v1 = vld [vmem:[%s2426_s5 + $0x7b8] sm:$0xff] }
 0x1a2   : > { %1659 = vst [vmem:[%s2538_s19 + $0x6d0] sm:$0xff] %v1147_v10  ;;  %v1354_v10 = vadd.f32 %v902_v49, %v650_v3  ;;  %v473_v3 = vld [vmem:[%s2426_s5 + $0x7c0] sm:$0xff] }
 0x1a3   : > { %1660 = vst [vmem:[%s2538_s19 + $0x6d8] sm:$0xff] %v1148_v12  ;;  %v1355_v12 = vadd.f32 %v902_v49, %v651_v5  ;;  %v474_v5 = vld [vmem:[%s2426_s5 + $0x7c8] sm:$0xff] }
 0x1a4   : > { %1661 = vst [vmem:[%s2538_s19 + $0x6e0] sm:$0xff] %v1149_v14  ;;  %v1356_v14 = vadd.f32 %v902_v49, %v652_v7  ;;  %v475_v7 = vld [vmem:[%s2426_s5 + $0x7d0] sm:$0xff] }
 0x1a5   : > { %1662 = vst [vmem:[%s2538_s19 + $0x6e8] sm:$0xff] %v1150_v15  ;;  %v656_v15 = vld [vmem:[%s2426_s5 + $0xd78] sm:$0xff] }
 0x1a6   : > { %1663 = vst [vmem:[%s2538_s19 + $0x6f0] sm:$0xff] %v1151_v18  ;;  %v852_v18 = vpop.permute.xlu1 %851  ;;  %v1360_v22 = vadd.f32 %v902_v49, %v656_v15  ;;  %v479_v15 = vld [vmem:[%s2426_s5 + $0x7f0] sm:$0xff] }
 0x1a7   : > { %1664 = vst [vmem:[%s2538_s19 + $0x6f8] sm:$0xff] %v1152_v20  ;;  %v1359_v20 = vadd.f32 %v902_v49, %v655_v13  ;;  %v1197_v49 = vadd.f32 %v852_v18, %v493_v42  ;;  %v1198_v50 = vadd.f32 %v852_v18, %v494_v44  ;;  %v478_v13 = vld [vmem:[%s2426_s5 + $0x7e8] sm:$0xff]  ;;  %v700_v42 = vld [vmem:[%s2426_s5 + $0xed8] sm:$0xff]  ;;  %v701_v44 = vld [vmem:[%s2426_s5 + $0xee0] sm:$0xff] }
 0x1a8   : > { %1633 = vst [vmem:[%s2538_s19 + $0x600] sm:$0xff] %v1121_v23  ;;  %v483_v23 = vld [vmem:[%s2426_s5 + $0x810] sm:$0xff] }
 0x1a9   : > { %1634 = vst [vmem:[%s2538_s19 + $0x608] sm:$0xff] %v1122_v25  ;;  %v1185_v25 = vadd.f32 %v852_v18, %v481_v19 }
 0x1aa   : > { %1635 = vst [vmem:[%s2538_s19 + $0x610] sm:$0xff] %v1123_v27  ;;  %v1186_v27 = vadd.f32 %v852_v18, %v482_v21  ;;  %v689_v21 = vld [vmem:[%s2426_s5 + $0xe80] sm:$0xff] }
 0x1ab   : > { %1636 = vst [vmem:[%s2538_s19 + $0x618] sm:$0xff] %v1124_v29  ;;  %v1187_v29 = vadd.f32 %v852_v18, %v483_v23  ;;  %v690_v23 = vld [vmem:[%s2426_s5 + $0xe88] sm:$0xff] }
 0x1ac   : > { %1637 = vst [vmem:[%s2538_s19 + $0x620] sm:$0xff] %v1125_v31  ;;  %v1188_v31 = vadd.f32 %v852_v18, %v484_v24 }
 0x1ad   : > { %1638 = vst [vmem:[%s2538_s19 + $0x628] sm:$0xff] %v1126_v33  ;;  %v1189_v33 = vadd.f32 %v852_v18, %v485_v26  ;;  %v692_v26 = vld [vmem:[%s2426_s5 + $0xe98] sm:$0xff] }
 0x1ae   : > { %1639 = vst [vmem:[%s2538_s19 + $0x630] sm:$0xff] %v1127_v35  ;;  %v1190_v35 = vadd.f32 %v852_v18, %v486_v28  ;;  %v693_v28 = vld [vmem:[%s2426_s5 + $0xea0] sm:$0xff] }
 0x1af   : > { %1640 = vst [vmem:[%s2538_s19 + $0x638] sm:$0xff] %v1128_v37  ;;  %v1191_v37 = vadd.f32 %v852_v18, %v487_v30  ;;  %v694_v30 = vld [vmem:[%s2426_s5 + $0xea8] sm:$0xff] }
 0x1b0   : > { %1641 = vst [vmem:[%s2538_s19 + $0x640] sm:$0xff] %v1129_v39  ;;  %v1192_v39 = vadd.f32 %v852_v18, %v488_v32  ;;  %v695_v32 = vld [vmem:[%s2426_s5 + $0xeb0] sm:$0xff] }
 0x1b1   : > { %1642 = vst [vmem:[%s2538_s19 + $0x648] sm:$0xff] %v1130_v41  ;;  %v1193_v41 = vadd.f32 %v852_v18, %v489_v34  ;;  %v696_v34 = vld [vmem:[%s2426_s5 + $0xeb8] sm:$0xff] }
 0x1b2   : > { %1643 = vst [vmem:[%s2538_s19 + $0x650] sm:$0xff] %v1131_v43  ;;  %v1194_v43 = vadd.f32 %v852_v18, %v490_v36  ;;  %v697_v36 = vld [vmem:[%s2426_s5 + $0xec0] sm:$0xff] }
 0x1b3   : > { %1644 = vst [vmem:[%s2538_s19 + $0x658] sm:$0xff] %v1132_v45  ;;  %v1195_v45 = vadd.f32 %v852_v18, %v491_v38  ;;  %v698_v38 = vld [vmem:[%s2426_s5 + $0xec8] sm:$0xff] }
 0x1b4   : > { %1645 = vst [vmem:[%s2538_s19 + $0x660] sm:$0xff] %v1133_v47  ;;  %v1196_v47 = vadd.f32 %v852_v18, %v492_v40  ;;  %v699_v40 = vld [vmem:[%s2426_s5 + $0xed0] sm:$0xff] }
 0x1b5   : > { %1646 = vst [vmem:[%s2538_s19 + $0x668] sm:$0xff] %v1134_v48  ;;  %v496_v48 = vld [vmem:[%s2426_s5 + $0x878] sm:$0xff] }
 0x1b6   : > { %1647 = vst [vmem:[%s2538_s19 + $0x670] sm:$0xff] %v1135_v51  ;;  %v847_v51 = vpop.permute.xlu0 %846  ;;  %v1200_v55 = vadd.f32 %v852_v18, %v496_v48  ;;  %v703_v48 = vld [vmem:[%s2426_s5 + $0xef0] sm:$0xff] }
 0x1b7   : > { %1648 = vst [vmem:[%s2538_s19 + $0x678] sm:$0xff] %v1136_v53  ;;  %v1199_v53 = vadd.f32 %v852_v18, %v495_v46  ;;  %v1181_v18 = vadd.f32 %v847_v51, %v477_v11  ;;  %v1182_v19 = vadd.f32 %v847_v51, %v478_v13  ;;  %v702_v46 = vld [vmem:[%s2426_s5 + $0xee8] sm:$0xff]  ;;  %v540_v11 = vld [vmem:[%s2426_s5 + $0x9d8] sm:$0xff]  ;;  %v541_v13 = vld [vmem:[%s2426_s5 + $0x9e0] sm:$0xff] }
 0x1b8   : > { %1857 = vst [vmem:[%s2538_s19 + $0xd00] sm:$0xff] %v1345_v56  ;;  %v467_v56 = vld [vmem:[%s2426_s5 + $0x790] sm:$0xff] }
 0x1b9   : > { %1858 = vst [vmem:[%s2538_s19 + $0xd08] sm:$0xff] %v1346_v58  ;;  %v1169_v58 = vadd.f32 %v847_v51, %v465_v52 }
 0x1ba   : > { %1859 = vst [vmem:[%s2538_s19 + $0xd10] sm:$0xff] %v1347_v60  ;;  %v1170_v60 = vadd.f32 %v847_v51, %v466_v54  ;;  %v529_v54 = vld [vmem:[%s2426_s5 + $0x980] sm:$0xff] }
 0x1bb   : > { %1860 = vst [vmem:[%s2538_s19 + $0xd18] sm:$0xff] %v1348_v62  ;;  %v1171_v62 = vadd.f32 %v847_v51, %v467_v56  ;;  %v530_v56 = vld [vmem:[%s2426_s5 + $0x988] sm:$0xff] }
 0x1bc   : > { %1861 = vst [vmem:[%s2538_s19 + $0xd20] sm:$0xff] %v1349_v0  ;;  %v1172_v0 = vadd.f32 %v847_v51, %v468_v57 }
 0x1bd   : > { %1862 = vst [vmem:[%s2538_s19 + $0xd28] sm:$0xff] %v1350_v2  ;;  %v1173_v2 = vadd.f32 %v847_v51, %v469_v59  ;;  %v532_v59 = vld [vmem:[%s2426_s5 + $0x998] sm:$0xff] }
 0x1be   : > { %1863 = vst [vmem:[%s2538_s19 + $0xd30] sm:$0xff] %v1351_v4  ;;  %v1174_v4 = vadd.f32 %v847_v51, %v470_v61  ;;  %v533_v61 = vld [vmem:[%s2426_s5 + $0x9a0] sm:$0xff] }
 0x1bf   : > { %1864 = vst [vmem:[%s2538_s19 + $0xd38] sm:$0xff] %v1352_v6  ;;  %v1175_v6 = vadd.f32 %v847_v51, %v471_v63  ;;  %v534_v63 = vld [vmem:[%s2426_s5 + $0x9a8] sm:$0xff] }
 0x1c0   : > { %1865 = vst [vmem:[%s2538_s19 + $0xd40] sm:$0xff] %v1353_v8  ;;  %v1176_v8 = vadd.f32 %v847_v51, %v472_v1  ;;  %v535_v1 = vld [vmem:[%s2426_s5 + $0x9b0] sm:$0xff] }
 0x1c1   : > { %1866 = vst [vmem:[%s2538_s19 + $0xd48] sm:$0xff] %v1354_v10  ;;  %v1177_v10 = vadd.f32 %v847_v51, %v473_v3  ;;  %v536_v3 = vld [vmem:[%s2426_s5 + $0x9b8] sm:$0xff] }
 0x1c2   : > { %1867 = vst [vmem:[%s2538_s19 + $0xd50] sm:$0xff] %v1355_v12  ;;  %v1178_v12 = vadd.f32 %v847_v51, %v474_v5  ;;  %v537_v5 = vld [vmem:[%s2426_s5 + $0x9c0] sm:$0xff] }
 0x1c3   : > { %1868 = vst [vmem:[%s2538_s19 + $0xd58] sm:$0xff] %v1356_v14  ;;  %v1179_v14 = vadd.f32 %v847_v51, %v475_v7  ;;  %v538_v7 = vld [vmem:[%s2426_s5 + $0x9c8] sm:$0xff] }
 0x1c4   : > { %1869 = vst [vmem:[%s2538_s19 + $0xd60] sm:$0xff] %v1357_v16  ;;  %v1180_v16 = vadd.f32 %v847_v51, %v476_v9  ;;  %v539_v9 = vld [vmem:[%s2426_s5 + $0x9d0] sm:$0xff] }
 0x1c5   : > { %1870 = vst [vmem:[%s2538_s19 + $0xd68] sm:$0xff] %v1358_v17  ;;  %v480_v17 = vld [vmem:[%s2426_s5 + $0x7f8] sm:$0xff] }
 0x1c6   : > { %1871 = vst [vmem:[%s2538_s19 + $0xd70] sm:$0xff] %v1359_v20  ;;  %v917_v20 = vpop.permute.xlu2 %916  ;;  %v1184_v24 = vadd.f32 %v847_v51, %v480_v17  ;;  %v543_v17 = vld [vmem:[%s2426_s5 + $0x9f0] sm:$0xff] }
 0x1c7   : > { %1872 = vst [vmem:[%s2538_s19 + $0xd78] sm:$0xff] %v1360_v22  ;;  %v1183_v22 = vadd.f32 %v847_v51, %v479_v15  ;;  %v1405_v51 = vadd.f32 %v917_v20, %v701_v44  ;;  %v1406_v52 = vadd.f32 %v917_v20, %v702_v46  ;;  %v542_v15 = vld [vmem:[%s2426_s5 + $0x9e8] sm:$0xff]  ;;  %v524_v44 = vld [vmem:[%s2426_s5 + $0x958] sm:$0xff]  ;;  %v525_v46 = vld [vmem:[%s2426_s5 + $0x960] sm:$0xff] }
 0x1c8   : > { %1697 = vst [vmem:[%s2538_s19 + $0x800] sm:$0xff] %v1185_v25  ;;  %v691_v25 = vld [vmem:[%s2426_s5 + $0xe90] sm:$0xff] }
 0x1c9   : > { %1698 = vst [vmem:[%s2538_s19 + $0x808] sm:$0xff] %v1186_v27  ;;  %v1393_v27 = vadd.f32 %v917_v20, %v689_v21 }
 0x1ca   : > { %1699 = vst [vmem:[%s2538_s19 + $0x810] sm:$0xff] %v1187_v29  ;;  %v1394_v29 = vadd.f32 %v917_v20, %v690_v23  ;;  %v513_v23 = vld [vmem:[%s2426_s5 + $0x900] sm:$0xff] }
 0x1cb   : > { %1700 = vst [vmem:[%s2538_s19 + $0x818] sm:$0xff] %v1188_v31  ;;  %v1395_v31 = vadd.f32 %v917_v20, %v691_v25  ;;  %v514_v25 = vld [vmem:[%s2426_s5 + $0x908] sm:$0xff] }
 0x1cc   : > { %1701 = vst [vmem:[%s2538_s19 + $0x820] sm:$0xff] %v1189_v33  ;;  %v1396_v33 = vadd.f32 %v917_v20, %v692_v26 }
 0x1cd   : > { %1702 = vst [vmem:[%s2538_s19 + $0x828] sm:$0xff] %v1190_v35  ;;  %v1397_v35 = vadd.f32 %v917_v20, %v693_v28  ;;  %v516_v28 = vld [vmem:[%s2426_s5 + $0x918] sm:$0xff] }
 0x1ce   : > { %1703 = vst [vmem:[%s2538_s19 + $0x830] sm:$0xff] %v1191_v37  ;;  %v1398_v37 = vadd.f32 %v917_v20, %v694_v30  ;;  %v517_v30 = vld [vmem:[%s2426_s5 + $0x920] sm:$0xff] }
 0x1cf   : > { %1704 = vst [vmem:[%s2538_s19 + $0x838] sm:$0xff] %v1192_v39  ;;  %v1399_v39 = vadd.f32 %v917_v20, %v695_v32  ;;  %v518_v32 = vld [vmem:[%s2426_s5 + $0x928] sm:$0xff] }
 0x1d0   : > { %1705 = vst [vmem:[%s2538_s19 + $0x840] sm:$0xff] %v1193_v41  ;;  %v1400_v41 = vadd.f32 %v917_v20, %v696_v34  ;;  %v519_v34 = vld [vmem:[%s2426_s5 + $0x930] sm:$0xff] }
 0x1d1   : > { %1706 = vst [vmem:[%s2538_s19 + $0x848] sm:$0xff] %v1194_v43  ;;  %v1401_v43 = vadd.f32 %v917_v20, %v697_v36  ;;  %v520_v36 = vld [vmem:[%s2426_s5 + $0x938] sm:$0xff] }
 0x1d2   : > { %1707 = vst [vmem:[%s2538_s19 + $0x850] sm:$0xff] %v1195_v45  ;;  %v1402_v45 = vadd.f32 %v917_v20, %v698_v38  ;;  %v521_v38 = vld [vmem:[%s2426_s5 + $0x940] sm:$0xff] }
 0x1d3   : > { %1708 = vst [vmem:[%s2538_s19 + $0x858] sm:$0xff] %v1196_v47  ;;  %v1403_v47 = vadd.f32 %v917_v20, %v699_v40  ;;  %v522_v40 = vld [vmem:[%s2426_s5 + $0x948] sm:$0xff] }
 0x1d4   : > { %1709 = vst [vmem:[%s2538_s19 + $0x860] sm:$0xff] %v1197_v49  ;;  %v1404_v49 = vadd.f32 %v917_v20, %v700_v42  ;;  %v523_v42 = vld [vmem:[%s2426_s5 + $0x950] sm:$0xff] }
 0x1d5   : > { %1710 = vst [vmem:[%s2538_s19 + $0x868] sm:$0xff] %v1198_v50  ;;  %v704_v50 = vld [vmem:[%s2426_s5 + $0xef8] sm:$0xff] }
 0x1d6   : > { %1711 = vst [vmem:[%s2538_s19 + $0x870] sm:$0xff] %v1199_v53  ;;  %v867_v53 = vpop.permute.xlu1 %866  ;;  %v1408_v57 = vadd.f32 %v917_v20, %v704_v50  ;;  %v527_v50 = vld [vmem:[%s2426_s5 + $0x970] sm:$0xff] }
 0x1d7   : > { %1712 = vst [vmem:[%s2538_s19 + $0x878] sm:$0xff] %v1200_v55  ;;  %v1407_v55 = vadd.f32 %v917_v20, %v703_v48  ;;  %v1245_v20 = vadd.f32 %v867_v53, %v541_v13  ;;  %v1246_v21 = vadd.f32 %v867_v53, %v542_v15  ;;  %v526_v48 = vld [vmem:[%s2426_s5 + $0x968] sm:$0xff]  ;;  %v588_v13 = vld [vmem:[%s2426_s5 + $0xb58] sm:$0xff]  ;;  %v589_v15 = vld [vmem:[%s2426_s5 + $0xb60] sm:$0xff] }
 0x1d8   : > { %1681 = vst [vmem:[%s2538_s19 + $0x780] sm:$0xff] %v1169_v58  ;;  %v531_v58 = vld [vmem:[%s2426_s5 + $0x990] sm:$0xff] }
 0x1d9   : > { %1682 = vst [vmem:[%s2538_s19 + $0x788] sm:$0xff] %v1170_v60  ;;  %v1233_v60 = vadd.f32 %v867_v53, %v529_v54 }
 0x1da   : > { %1683 = vst [vmem:[%s2538_s19 + $0x790] sm:$0xff] %v1171_v62  ;;  %v1234_v62 = vadd.f32 %v867_v53, %v530_v56  ;;  %v577_v56 = vld [vmem:[%s2426_s5 + $0xb00] sm:$0xff] }
 0x1db   : > { %1684 = vst [vmem:[%s2538_s19 + $0x798] sm:$0xff] %v1172_v0  ;;  %v1235_v0 = vadd.f32 %v867_v53, %v531_v58  ;;  %v578_v58 = vld [vmem:[%s2426_s5 + $0xb08] sm:$0xff] }
 0x1dc   : > { %1685 = vst [vmem:[%s2538_s19 + $0x7a0] sm:$0xff] %v1173_v2  ;;  %v1236_v2 = vadd.f32 %v867_v53, %v532_v59 }
 0x1dd   : > { %1686 = vst [vmem:[%s2538_s19 + $0x7a8] sm:$0xff] %v1174_v4  ;;  %v1237_v4 = vadd.f32 %v867_v53, %v533_v61  ;;  %v580_v61 = vld [vmem:[%s2426_s5 + $0xb18] sm:$0xff] }
 0x1de   : > { %1687 = vst [vmem:[%s2538_s19 + $0x7b0] sm:$0xff] %v1175_v6  ;;  %v1238_v6 = vadd.f32 %v867_v53, %v534_v63  ;;  %v581_v63 = vld [vmem:[%s2426_s5 + $0xb20] sm:$0xff] }
 0x1df   : > { %1688 = vst [vmem:[%s2538_s19 + $0x7b8] sm:$0xff] %v1176_v8  ;;  %v1239_v8 = vadd.f32 %v867_v53, %v535_v1  ;;  %v582_v1 = vld [vmem:[%s2426_s5 + $0xb28] sm:$0xff] }
 0x1e0   : > { %1689 = vst [vmem:[%s2538_s19 + $0x7c0] sm:$0xff] %v1177_v10  ;;  %v1240_v10 = vadd.f32 %v867_v53, %v536_v3  ;;  %v583_v3 = vld [vmem:[%s2426_s5 + $0xb30] sm:$0xff] }
 0x1e1   : > { %1690 = vst [vmem:[%s2538_s19 + $0x7c8] sm:$0xff] %v1178_v12  ;;  %v1241_v12 = vadd.f32 %v867_v53, %v537_v5  ;;  %v584_v5 = vld [vmem:[%s2426_s5 + $0xb38] sm:$0xff] }
 0x1e2   : > { %1691 = vst [vmem:[%s2538_s19 + $0x7d0] sm:$0xff] %v1179_v14  ;;  %v1242_v14 = vadd.f32 %v867_v53, %v538_v7  ;;  %v585_v7 = vld [vmem:[%s2426_s5 + $0xb40] sm:$0xff] }
 0x1e3   : > { %1692 = vst [vmem:[%s2538_s19 + $0x7d8] sm:$0xff] %v1180_v16  ;;  %v1243_v16 = vadd.f32 %v867_v53, %v539_v9  ;;  %v586_v9 = vld [vmem:[%s2426_s5 + $0xb48] sm:$0xff] }
 0x1e4   : > { %1693 = vst [vmem:[%s2538_s19 + $0x7e0] sm:$0xff] %v1181_v18  ;;  %v1244_v18 = vadd.f32 %v867_v53, %v540_v11  ;;  %v587_v11 = vld [vmem:[%s2426_s5 + $0xb50] sm:$0xff] }
 0x1e5   : > { %1694 = vst [vmem:[%s2538_s19 + $0x7e8] sm:$0xff] %v1182_v19  ;;  %v544_v19 = vld [vmem:[%s2426_s5 + $0x9f8] sm:$0xff] }
 0x1e6   : > { %1695 = vst [vmem:[%s2538_s19 + $0x7f0] sm:$0xff] %v1183_v22  ;;  %v862_v22 = vpop.permute.xlu0 %861  ;;  %v1248_v26 = vadd.f32 %v867_v53, %v544_v19  ;;  %v591_v19 = vld [vmem:[%s2426_s5 + $0xb70] sm:$0xff] }
 0x1e7   : > { %1696 = vst [vmem:[%s2538_s19 + $0x7f8] sm:$0xff] %v1184_v24  ;;  %v1247_v24 = vadd.f32 %v867_v53, %v543_v17  ;;  %v1229_v53 = vadd.f32 %v862_v22, %v525_v46  ;;  %v1230_v54 = vadd.f32 %v862_v22, %v526_v48  ;;  %v590_v17 = vld [vmem:[%s2426_s5 + $0xb68] sm:$0xff]  ;;  %v572_v46 = vld [vmem:[%s2426_s5 + $0xad8] sm:$0xff]  ;;  %v573_v48 = vld [vmem:[%s2426_s5 + $0xae0] sm:$0xff] }
 0x1e8   : > { %1905 = vst [vmem:[%s2538_s19 + $0xe80] sm:$0xff] %v1393_v27  ;;  %v515_v27 = vld [vmem:[%s2426_s5 + $0x910] sm:$0xff] }
 0x1e9   : > { %1906 = vst [vmem:[%s2538_s19 + $0xe88] sm:$0xff] %v1394_v29  ;;  %v1217_v29 = vadd.f32 %v862_v22, %v513_v23 }
 0x1ea   : > { %1907 = vst [vmem:[%s2538_s19 + $0xe90] sm:$0xff] %v1395_v31  ;;  %v1218_v31 = vadd.f32 %v862_v22, %v514_v25  ;;  %v561_v25 = vld [vmem:[%s2426_s5 + $0xa80] sm:$0xff] }
 0x1eb   : > { %1908 = vst [vmem:[%s2538_s19 + $0xe98] sm:$0xff] %v1396_v33  ;;  %v1219_v33 = vadd.f32 %v862_v22, %v515_v27  ;;  %v562_v27 = vld [vmem:[%s2426_s5 + $0xa88] sm:$0xff] }
 0x1ec   : > { %1909 = vst [vmem:[%s2538_s19 + $0xea0] sm:$0xff] %v1397_v35  ;;  %v1220_v35 = vadd.f32 %v862_v22, %v516_v28 }
 0x1ed   : > { %1910 = vst [vmem:[%s2538_s19 + $0xea8] sm:$0xff] %v1398_v37  ;;  %v1221_v37 = vadd.f32 %v862_v22, %v517_v30  ;;  %v564_v30 = vld [vmem:[%s2426_s5 + $0xa98] sm:$0xff] }
 0x1ee   : > { %1911 = vst [vmem:[%s2538_s19 + $0xeb0] sm:$0xff] %v1399_v39  ;;  %v1222_v39 = vadd.f32 %v862_v22, %v518_v32  ;;  %v565_v32 = vld [vmem:[%s2426_s5 + $0xaa0] sm:$0xff] }
 0x1ef   : > { %1912 = vst [vmem:[%s2538_s19 + $0xeb8] sm:$0xff] %v1400_v41  ;;  %v1223_v41 = vadd.f32 %v862_v22, %v519_v34  ;;  %v566_v34 = vld [vmem:[%s2426_s5 + $0xaa8] sm:$0xff] }
 0x1f0   : > { %1913 = vst [vmem:[%s2538_s19 + $0xec0] sm:$0xff] %v1401_v43  ;;  %v1224_v43 = vadd.f32 %v862_v22, %v520_v36  ;;  %v567_v36 = vld [vmem:[%s2426_s5 + $0xab0] sm:$0xff] }
 0x1f1   : > { %1914 = vst [vmem:[%s2538_s19 + $0xec8] sm:$0xff] %v1402_v45  ;;  %v1225_v45 = vadd.f32 %v862_v22, %v521_v38  ;;  %v568_v38 = vld [vmem:[%s2426_s5 + $0xab8] sm:$0xff] }
 0x1f2   : > { %1915 = vst [vmem:[%s2538_s19 + $0xed0] sm:$0xff] %v1403_v47  ;;  %v1226_v47 = vadd.f32 %v862_v22, %v522_v40  ;;  %v569_v40 = vld [vmem:[%s2426_s5 + $0xac0] sm:$0xff] }
 0x1f3   : > { %1916 = vst [vmem:[%s2538_s19 + $0xed8] sm:$0xff] %v1404_v49  ;;  %v1227_v49 = vadd.f32 %v862_v22, %v523_v42  ;;  %v570_v42 = vld [vmem:[%s2426_s5 + $0xac8] sm:$0xff] }
 0x1f4   : > { %1917 = vst [vmem:[%s2538_s19 + $0xee0] sm:$0xff] %v1405_v51  ;;  %v1228_v51 = vadd.f32 %v862_v22, %v524_v44  ;;  %v571_v44 = vld [vmem:[%s2426_s5 + $0xad0] sm:$0xff] }
 0x1f5   : > { %1918 = vst [vmem:[%s2538_s19 + $0xee8] sm:$0xff] %v1406_v52  ;;  %v528_v52 = vld [vmem:[%s2426_s5 + $0x978] sm:$0xff] }
 0x1f6   : > { %1919 = vst [vmem:[%s2538_s19 + $0xef0] sm:$0xff] %v1407_v55  ;;  %v882_v55 = vpop.permute.xlu1 %881  ;;  %v1232_v59 = vadd.f32 %v862_v22, %v528_v52  ;;  %v575_v52 = vld [vmem:[%s2426_s5 + $0xaf0] sm:$0xff] }
 0x1f7   : > { %1920 = vst [vmem:[%s2538_s19 + $0xef8] sm:$0xff] %v1408_v57  ;;  %v1231_v57 = vadd.f32 %v862_v22, %v527_v50  ;;  %v1293_v22 = vadd.f32 %v882_v55, %v589_v15  ;;  %v1294_v23 = vadd.f32 %v882_v55, %v590_v17  ;;  %v574_v50 = vld [vmem:[%s2426_s5 + $0xae8] sm:$0xff]  ;;  %v636_v15 = vld [vmem:[%s2426_s5 + $0xcd8] sm:$0xff]  ;;  %v637_v17 = vld [vmem:[%s2426_s5 + $0xce0] sm:$0xff] }
 0x1f8   : > { %1745 = vst [vmem:[%s2538_s19 + $0x980] sm:$0xff] %v1233_v60  ;;  %v579_v60 = vld [vmem:[%s2426_s5 + $0xb10] sm:$0xff] }
 0x1f9   : > { %1746 = vst [vmem:[%s2538_s19 + $0x988] sm:$0xff] %v1234_v62  ;;  %v1281_v62 = vadd.f32 %v882_v55, %v577_v56 }
 0x1fa   : > { %1747 = vst [vmem:[%s2538_s19 + $0x990] sm:$0xff] %v1235_v0  ;;  %v1282_v0 = vadd.f32 %v882_v55, %v578_v58  ;;  %v625_v58 = vld [vmem:[%s2426_s5 + $0xc80] sm:$0xff] }
 0x1fb   : > { %1748 = vst [vmem:[%s2538_s19 + $0x998] sm:$0xff] %v1236_v2  ;;  %v1283_v2 = vadd.f32 %v882_v55, %v579_v60  ;;  %v626_v60 = vld [vmem:[%s2426_s5 + $0xc88] sm:$0xff] }
 0x1fc   : > { %1749 = vst [vmem:[%s2538_s19 + $0x9a0] sm:$0xff] %v1237_v4  ;;  %v1284_v4 = vadd.f32 %v882_v55, %v580_v61 }
 0x1fd   : > { %1750 = vst [vmem:[%s2538_s19 + $0x9a8] sm:$0xff] %v1238_v6  ;;  %v1285_v6 = vadd.f32 %v882_v55, %v581_v63  ;;  %v628_v63 = vld [vmem:[%s2426_s5 + $0xc98] sm:$0xff] }
 0x1fe   : > { %1751 = vst [vmem:[%s2538_s19 + $0x9b0] sm:$0xff] %v1239_v8  ;;  %v1286_v8 = vadd.f32 %v882_v55, %v582_v1  ;;  %v629_v1 = vld [vmem:[%s2426_s5 + $0xca0] sm:$0xff] }
 0x1ff   : > { %1752 = vst [vmem:[%s2538_s19 + $0x9b8] sm:$0xff] %v1240_v10  ;;  %v1287_v10 = vadd.f32 %v882_v55, %v583_v3  ;;  %v630_v3 = vld [vmem:[%s2426_s5 + $0xca8] sm:$0xff] }
 0x200   : > { %1753 = vst [vmem:[%s2538_s19 + $0x9c0] sm:$0xff] %v1241_v12  ;;  %v1288_v12 = vadd.f32 %v882_v55, %v584_v5  ;;  %v631_v5 = vld [vmem:[%s2426_s5 + $0xcb0] sm:$0xff] }
 0x201   : > { %1754 = vst [vmem:[%s2538_s19 + $0x9c8] sm:$0xff] %v1242_v14  ;;  %v1289_v14 = vadd.f32 %v882_v55, %v585_v7  ;;  %v632_v7 = vld [vmem:[%s2426_s5 + $0xcb8] sm:$0xff] }
 0x202   : > { %1755 = vst [vmem:[%s2538_s19 + $0x9d0] sm:$0xff] %v1243_v16  ;;  %v1290_v16 = vadd.f32 %v882_v55, %v586_v9  ;;  %v633_v9 = vld [vmem:[%s2426_s5 + $0xcc0] sm:$0xff] }
 0x203   : > { %1756 = vst [vmem:[%s2538_s19 + $0x9d8] sm:$0xff] %v1244_v18  ;;  %v1291_v18 = vadd.f32 %v882_v55, %v587_v11  ;;  %v634_v11 = vld [vmem:[%s2426_s5 + $0xcc8] sm:$0xff] }
 0x204   : > { %1757 = vst [vmem:[%s2538_s19 + $0x9e0] sm:$0xff] %v1245_v20  ;;  %v1292_v20 = vadd.f32 %v882_v55, %v588_v13  ;;  %v635_v13 = vld [vmem:[%s2426_s5 + $0xcd0] sm:$0xff] }
 0x205   : > { %1758 = vst [vmem:[%s2538_s19 + $0x9e8] sm:$0xff] %v1246_v21  ;;  %v592_v21 = vld [vmem:[%s2426_s5 + $0xb78] sm:$0xff] }
 0x206   : > { %1759 = vst [vmem:[%s2538_s19 + $0x9f0] sm:$0xff] %v1247_v24  ;;  %v877_v24 = vpop.permute.xlu0 %876  ;;  %v1296_v28 = vadd.f32 %v882_v55, %v592_v21  ;;  %v639_v21 = vld [vmem:[%s2426_s5 + $0xcf0] sm:$0xff] }
 0x207   : > { %1760 = vst [vmem:[%s2538_s19 + $0x9f8] sm:$0xff] %v1248_v26  ;;  %v1295_v26 = vadd.f32 %v882_v55, %v591_v19  ;;  %v1277_v55 = vadd.f32 %v877_v24, %v573_v48  ;;  %v1278_v56 = vadd.f32 %v877_v24, %v574_v50  ;;  %v638_v19 = vld [vmem:[%s2426_s5 + $0xce8] sm:$0xff]  ;;  %v620_v48 = vld [vmem:[%s2426_s5 + $0xc58] sm:$0xff]  ;;  %v621_v50 = vld [vmem:[%s2426_s5 + $0xc60] sm:$0xff] }
 0x208   : > { %1729 = vst [vmem:[%s2538_s19 + $0x900] sm:$0xff] %v1217_v29  ;;  %v563_v29 = vld [vmem:[%s2426_s5 + $0xa90] sm:$0xff] }
 0x209   : > { %1730 = vst [vmem:[%s2538_s19 + $0x908] sm:$0xff] %v1218_v31  ;;  %v1265_v31 = vadd.f32 %v877_v24, %v561_v25 }
 0x20a   : > { %1731 = vst [vmem:[%s2538_s19 + $0x910] sm:$0xff] %v1219_v33  ;;  %v1266_v33 = vadd.f32 %v877_v24, %v562_v27  ;;  %v609_v27 = vld [vmem:[%s2426_s5 + $0xc00] sm:$0xff] }
 0x20b   : > { %1732 = vst [vmem:[%s2538_s19 + $0x918] sm:$0xff] %v1220_v35  ;;  %v1267_v35 = vadd.f32 %v877_v24, %v563_v29  ;;  %v610_v29 = vld [vmem:[%s2426_s5 + $0xc08] sm:$0xff] }
 0x20c   : > { %1733 = vst [vmem:[%s2538_s19 + $0x920] sm:$0xff] %v1221_v37  ;;  %v1268_v37 = vadd.f32 %v877_v24, %v564_v30 }
 0x20d   : > { %1734 = vst [vmem:[%s2538_s19 + $0x928] sm:$0xff] %v1222_v39  ;;  %v1269_v39 = vadd.f32 %v877_v24, %v565_v32  ;;  %v612_v32 = vld [vmem:[%s2426_s5 + $0xc18] sm:$0xff] }
 0x20e   : > { %1735 = vst [vmem:[%s2538_s19 + $0x930] sm:$0xff] %v1223_v41  ;;  %v1270_v41 = vadd.f32 %v877_v24, %v566_v34  ;;  %v613_v34 = vld [vmem:[%s2426_s5 + $0xc20] sm:$0xff] }
 0x20f   : > { %1736 = vst [vmem:[%s2538_s19 + $0x938] sm:$0xff] %v1224_v43  ;;  %v1271_v43 = vadd.f32 %v877_v24, %v567_v36  ;;  %v614_v36 = vld [vmem:[%s2426_s5 + $0xc28] sm:$0xff] }
 0x210   : > { %1737 = vst [vmem:[%s2538_s19 + $0x940] sm:$0xff] %v1225_v45  ;;  %v1272_v45 = vadd.f32 %v877_v24, %v568_v38  ;;  %v615_v38 = vld [vmem:[%s2426_s5 + $0xc30] sm:$0xff] }
 0x211   : > { %1738 = vst [vmem:[%s2538_s19 + $0x948] sm:$0xff] %v1226_v47  ;;  %v1273_v47 = vadd.f32 %v877_v24, %v569_v40  ;;  %v616_v40 = vld [vmem:[%s2426_s5 + $0xc38] sm:$0xff] }
 0x212   : > { %1739 = vst [vmem:[%s2538_s19 + $0x950] sm:$0xff] %v1227_v49  ;;  %v1274_v49 = vadd.f32 %v877_v24, %v570_v42  ;;  %v617_v42 = vld [vmem:[%s2426_s5 + $0xc40] sm:$0xff] }
 0x213   : > { %1740 = vst [vmem:[%s2538_s19 + $0x958] sm:$0xff] %v1228_v51  ;;  %v1275_v51 = vadd.f32 %v877_v24, %v571_v44  ;;  %v618_v44 = vld [vmem:[%s2426_s5 + $0xc48] sm:$0xff] }
 0x214   : > { %1741 = vst [vmem:[%s2538_s19 + $0x960] sm:$0xff] %v1229_v53  ;;  %v1276_v53 = vadd.f32 %v877_v24, %v572_v46  ;;  %v619_v46 = vld [vmem:[%s2426_s5 + $0xc50] sm:$0xff] }
 0x215   : > { %1742 = vst [vmem:[%s2538_s19 + $0x968] sm:$0xff] %v1230_v54  ;;  %v576_v54 = vld [vmem:[%s2426_s5 + $0xaf8] sm:$0xff] }
 0x216   : > { %1743 = vst [vmem:[%s2538_s19 + $0x970] sm:$0xff] %v1231_v57  ;;  %v897_v57 = vpop.permute.xlu1 %896  ;;  %v1280_v61 = vadd.f32 %v877_v24, %v576_v54  ;;  %v623_v54 = vld [vmem:[%s2426_s5 + $0xc70] sm:$0xff] }
 0x217   : > { %1744 = vst [vmem:[%s2538_s19 + $0x978] sm:$0xff] %v1232_v59  ;;  %v1279_v59 = vadd.f32 %v877_v24, %v575_v52  ;;  %v1341_v24 = vadd.f32 %v897_v57, %v637_v17  ;;  %v1342_v25 = vadd.f32 %v897_v57, %v638_v19  ;;  %v622_v52 = vld [vmem:[%s2426_s5 + $0xc68] sm:$0xff]  ;;  %v684_v17 = vld [vmem:[%s2426_s5 + $0xe58] sm:$0xff]  ;;  %v685_v19 = vld [vmem:[%s2426_s5 + $0xe60] sm:$0xff] }
 0x218   : > { %1793 = vst [vmem:[%s2538_s19 + $0xb00] sm:$0xff] %v1281_v62  ;;  %v627_v62 = vld [vmem:[%s2426_s5 + $0xc90] sm:$0xff] }
 0x219   : > { %1794 = vst [vmem:[%s2538_s19 + $0xb08] sm:$0xff] %v1282_v0  ;;  %v1329_v0 = vadd.f32 %v897_v57, %v625_v58 }
 0x21a   : > { %1795 = vst [vmem:[%s2538_s19 + $0xb10] sm:$0xff] %v1283_v2  ;;  %v1330_v2 = vadd.f32 %v897_v57, %v626_v60  ;;  %v673_v60 = vld [vmem:[%s2426_s5 + $0xe00] sm:$0xff] }
 0x21b   : > { %1796 = vst [vmem:[%s2538_s19 + $0xb18] sm:$0xff] %v1284_v4  ;;  %v1331_v4 = vadd.f32 %v897_v57, %v627_v62  ;;  %v674_v62 = vld [vmem:[%s2426_s5 + $0xe08] sm:$0xff] }
 0x21c   : > { %1797 = vst [vmem:[%s2538_s19 + $0xb20] sm:$0xff] %v1285_v6  ;;  %v1332_v6 = vadd.f32 %v897_v57, %v628_v63 }
 0x21d   : > { %1798 = vst [vmem:[%s2538_s19 + $0xb28] sm:$0xff] %v1286_v8  ;;  %v1333_v8 = vadd.f32 %v897_v57, %v629_v1  ;;  %v676_v1 = vld [vmem:[%s2426_s5 + $0xe18] sm:$0xff] }
 0x21e   : > { %1799 = vst [vmem:[%s2538_s19 + $0xb30] sm:$0xff] %v1287_v10  ;;  %v1334_v10 = vadd.f32 %v897_v57, %v630_v3  ;;  %v677_v3 = vld [vmem:[%s2426_s5 + $0xe20] sm:$0xff] }
 0x21f   : > { %1800 = vst [vmem:[%s2538_s19 + $0xb38] sm:$0xff] %v1288_v12  ;;  %v1335_v12 = vadd.f32 %v897_v57, %v631_v5  ;;  %v678_v5 = vld [vmem:[%s2426_s5 + $0xe28] sm:$0xff] }
 0x220   : > { %1801 = vst [vmem:[%s2538_s19 + $0xb40] sm:$0xff] %v1289_v14  ;;  %v1336_v14 = vadd.f32 %v897_v57, %v632_v7  ;;  %v679_v7 = vld [vmem:[%s2426_s5 + $0xe30] sm:$0xff] }
 0x221   : > { %1802 = vst [vmem:[%s2538_s19 + $0xb48] sm:$0xff] %v1290_v16  ;;  %v1337_v16 = vadd.f32 %v897_v57, %v633_v9  ;;  %v680_v9 = vld [vmem:[%s2426_s5 + $0xe38] sm:$0xff] }
 0x222   : > { %1803 = vst [vmem:[%s2538_s19 + $0xb50] sm:$0xff] %v1291_v18  ;;  %v1338_v18 = vadd.f32 %v897_v57, %v634_v11  ;;  %v681_v11 = vld [vmem:[%s2426_s5 + $0xe40] sm:$0xff] }
 0x223   : > { %1804 = vst [vmem:[%s2538_s19 + $0xb58] sm:$0xff] %v1292_v20  ;;  %v1339_v20 = vadd.f32 %v897_v57, %v635_v13  ;;  %v682_v13 = vld [vmem:[%s2426_s5 + $0xe48] sm:$0xff] }
 0x224   : > { %1805 = vst [vmem:[%s2538_s19 + $0xb60] sm:$0xff] %v1293_v22  ;;  %v1340_v22 = vadd.f32 %v897_v57, %v636_v15  ;;  %v683_v15 = vld [vmem:[%s2426_s5 + $0xe50] sm:$0xff] }
 0x225   : > { %1806 = vst [vmem:[%s2538_s19 + $0xb68] sm:$0xff] %v1294_v23  ;;  %v640_v23 = vld [vmem:[%s2426_s5 + $0xcf8] sm:$0xff] }
 0x226   : > { %1807 = vst [vmem:[%s2538_s19 + $0xb70] sm:$0xff] %v1295_v26  ;;  %v892_v26 = vpop.permute.xlu0 %891  ;;  %v1344_v30 = vadd.f32 %v897_v57, %v640_v23  ;;  %v687_v23 = vld [vmem:[%s2426_s5 + $0xe70] sm:$0xff] }
 0x227   : > { %1808 = vst [vmem:[%s2538_s19 + $0xb78] sm:$0xff] %v1296_v28  ;;  %v1343_v28 = vadd.f32 %v897_v57, %v639_v21  ;;  %v1325_v57 = vadd.f32 %v892_v26, %v621_v50  ;;  %v1326_v58 = vadd.f32 %v892_v26, %v622_v52  ;;  %v686_v21 = vld [vmem:[%s2426_s5 + $0xe68] sm:$0xff]  ;;  %v668_v50 = vld [vmem:[%s2426_s5 + $0xdd8] sm:$0xff]  ;;  %v669_v52 = vld [vmem:[%s2426_s5 + $0xde0] sm:$0xff] }
 0x228   : > { %1777 = vst [vmem:[%s2538_s19 + $0xa80] sm:$0xff] %v1265_v31  ;;  %v611_v31 = vld [vmem:[%s2426_s5 + $0xc10] sm:$0xff] }
 0x229   : > { %1778 = vst [vmem:[%s2538_s19 + $0xa88] sm:$0xff] %v1266_v33  ;;  %v1313_v33 = vadd.f32 %v892_v26, %v609_v27 }
 0x22a   : > { %1779 = vst [vmem:[%s2538_s19 + $0xa90] sm:$0xff] %v1267_v35  ;;  %v1314_v35 = vadd.f32 %v892_v26, %v610_v29  ;;  %v657_v29 = vld [vmem:[%s2426_s5 + $0xd80] sm:$0xff] }
 0x22b   : > { %1780 = vst [vmem:[%s2538_s19 + $0xa98] sm:$0xff] %v1268_v37  ;;  %v1315_v37 = vadd.f32 %v892_v26, %v611_v31  ;;  %v658_v31 = vld [vmem:[%s2426_s5 + $0xd88] sm:$0xff] }
 0x22c   : > { %1781 = vst [vmem:[%s2538_s19 + $0xaa0] sm:$0xff] %v1269_v39  ;;  %v1316_v39 = vadd.f32 %v892_v26, %v612_v32 }
 0x22d   : > { %1782 = vst [vmem:[%s2538_s19 + $0xaa8] sm:$0xff] %v1270_v41  ;;  %v1317_v41 = vadd.f32 %v892_v26, %v613_v34  ;;  %v660_v34 = vld [vmem:[%s2426_s5 + $0xd98] sm:$0xff] }
 0x22e   : > { %1783 = vst [vmem:[%s2538_s19 + $0xab0] sm:$0xff] %v1271_v43  ;;  %v1318_v43 = vadd.f32 %v892_v26, %v614_v36  ;;  %v661_v36 = vld [vmem:[%s2426_s5 + $0xda0] sm:$0xff] }
 0x22f   : > { %1784 = vst [vmem:[%s2538_s19 + $0xab8] sm:$0xff] %v1272_v45  ;;  %v1319_v45 = vadd.f32 %v892_v26, %v615_v38  ;;  %v662_v38 = vld [vmem:[%s2426_s5 + $0xda8] sm:$0xff] }
 0x230   : > { %1785 = vst [vmem:[%s2538_s19 + $0xac0] sm:$0xff] %v1273_v47  ;;  %v1320_v47 = vadd.f32 %v892_v26, %v616_v40  ;;  %v663_v40 = vld [vmem:[%s2426_s5 + $0xdb0] sm:$0xff] }
 0x231   : > { %1786 = vst [vmem:[%s2538_s19 + $0xac8] sm:$0xff] %v1274_v49  ;;  %v1321_v49 = vadd.f32 %v892_v26, %v617_v42  ;;  %v664_v42 = vld [vmem:[%s2426_s5 + $0xdb8] sm:$0xff] }
 0x232   : > { %1787 = vst [vmem:[%s2538_s19 + $0xad0] sm:$0xff] %v1275_v51  ;;  %v1322_v51 = vadd.f32 %v892_v26, %v618_v44  ;;  %v665_v44 = vld [vmem:[%s2426_s5 + $0xdc0] sm:$0xff] }
 0x233   : > { %1788 = vst [vmem:[%s2538_s19 + $0xad8] sm:$0xff] %v1276_v53  ;;  %v1323_v53 = vadd.f32 %v892_v26, %v619_v46  ;;  %v666_v46 = vld [vmem:[%s2426_s5 + $0xdc8] sm:$0xff] }
 0x234   : > { %1789 = vst [vmem:[%s2538_s19 + $0xae0] sm:$0xff] %v1277_v55  ;;  %v1324_v55 = vadd.f32 %v892_v26, %v620_v48  ;;  %v667_v48 = vld [vmem:[%s2426_s5 + $0xdd0] sm:$0xff] }
 0x235   : > { %1790 = vst [vmem:[%s2538_s19 + $0xae8] sm:$0xff] %v1278_v56  ;;  %v624_v56 = vld [vmem:[%s2426_s5 + $0xc78] sm:$0xff] }
 0x236   : > { %1791 = vst [vmem:[%s2538_s19 + $0xaf0] sm:$0xff] %v1279_v59  ;;  %v912_v59 = vpop.permute.xlu1 %911  ;;  %v1328_v63 = vadd.f32 %v892_v26, %v624_v56  ;;  %v671_v56 = vld [vmem:[%s2426_s5 + $0xdf0] sm:$0xff] }
 0x237   : > { %1792 = vst [vmem:[%s2538_s19 + $0xaf8] sm:$0xff] %v1280_v61  ;;  %v1327_v61 = vadd.f32 %v892_v26, %v623_v54  ;;  %v1389_v26 = vadd.f32 %v912_v59, %v685_v19  ;;  %v1390_v27 = vadd.f32 %v912_v59, %v686_v21  ;;  %v670_v54 = vld [vmem:[%s2426_s5 + $0xde8] sm:$0xff]  ;;  %v732_v19 = vld [vmem:[%s2426_s5 + $0xfd8] sm:$0xff]  ;;  %v733_v21 = vld [vmem:[%s2426_s5 + $0xfe0] sm:$0xff] }
 0x238   : > { %1841 = vst [vmem:[%s2538_s19 + $0xc80] sm:$0xff] %v1329_v0  ;;  %v675_v0 = vld [vmem:[%s2426_s5 + $0xe10] sm:$0xff] }
 0x239   : > { %1842 = vst [vmem:[%s2538_s19 + $0xc88] sm:$0xff] %v1330_v2  ;;  %v1377_v2 = vadd.f32 %v912_v59, %v673_v60 }
 0x23a   : > { %1843 = vst [vmem:[%s2538_s19 + $0xc90] sm:$0xff] %v1331_v4  ;;  %v1378_v4 = vadd.f32 %v912_v59, %v674_v62  ;;  %v721_v62 = vld [vmem:[%s2426_s5 + $0xf80] sm:$0xff] }
 0x23b   : > { %1844 = vst [vmem:[%s2538_s19 + $0xc98] sm:$0xff] %v1332_v6  ;;  %v1379_v6 = vadd.f32 %v912_v59, %v675_v0  ;;  %v722_v0 = vld [vmem:[%s2426_s5 + $0xf88] sm:$0xff] }
 0x23c   : > { %1845 = vst [vmem:[%s2538_s19 + $0xca0] sm:$0xff] %v1333_v8  ;;  %v1380_v8 = vadd.f32 %v912_v59, %v676_v1 }
 0x23d   : > { %1846 = vst [vmem:[%s2538_s19 + $0xca8] sm:$0xff] %v1334_v10  ;;  %v1381_v10 = vadd.f32 %v912_v59, %v677_v3  ;;  %v724_v3 = vld [vmem:[%s2426_s5 + $0xf98] sm:$0xff] }
 0x23e   : > { %1847 = vst [vmem:[%s2538_s19 + $0xcb0] sm:$0xff] %v1335_v12  ;;  %v1382_v12 = vadd.f32 %v912_v59, %v678_v5  ;;  %v725_v5 = vld [vmem:[%s2426_s5 + $0xfa0] sm:$0xff] }
 0x23f   : > { %1848 = vst [vmem:[%s2538_s19 + $0xcb8] sm:$0xff] %v1336_v14  ;;  %v1383_v14 = vadd.f32 %v912_v59, %v679_v7  ;;  %v726_v7 = vld [vmem:[%s2426_s5 + $0xfa8] sm:$0xff] }
 0x240   : > { %1849 = vst [vmem:[%s2538_s19 + $0xcc0] sm:$0xff] %v1337_v16  ;;  %v1384_v16 = vadd.f32 %v912_v59, %v680_v9  ;;  %v727_v9 = vld [vmem:[%s2426_s5 + $0xfb0] sm:$0xff] }
 0x241   : > { %1850 = vst [vmem:[%s2538_s19 + $0xcc8] sm:$0xff] %v1338_v18  ;;  %v1385_v18 = vadd.f32 %v912_v59, %v681_v11  ;;  %v728_v11 = vld [vmem:[%s2426_s5 + $0xfb8] sm:$0xff] }
 0x242   : > { %1851 = vst [vmem:[%s2538_s19 + $0xcd0] sm:$0xff] %v1339_v20  ;;  %v1386_v20 = vadd.f32 %v912_v59, %v682_v13  ;;  %v729_v13 = vld [vmem:[%s2426_s5 + $0xfc0] sm:$0xff] }
 0x243   : > { %1852 = vst [vmem:[%s2538_s19 + $0xcd8] sm:$0xff] %v1340_v22  ;;  %v1387_v22 = vadd.f32 %v912_v59, %v683_v15  ;;  %v730_v15 = vld [vmem:[%s2426_s5 + $0xfc8] sm:$0xff] }
 0x244   : > { %1853 = vst [vmem:[%s2538_s19 + $0xce0] sm:$0xff] %v1341_v24  ;;  %v1388_v24 = vadd.f32 %v912_v59, %v684_v17  ;;  %v731_v17 = vld [vmem:[%s2426_s5 + $0xfd0] sm:$0xff] }
 0x245   : > { %1854 = vst [vmem:[%s2538_s19 + $0xce8] sm:$0xff] %v1342_v25  ;;  %v688_v25 = vld [vmem:[%s2426_s5 + $0xe78] sm:$0xff] }
 0x246   : > { %1855 = vst [vmem:[%s2538_s19 + $0xcf0] sm:$0xff] %v1343_v28  ;;  %v907_v28 = vpop.permute.xlu0 %906  ;;  %v1392_v32 = vadd.f32 %v912_v59, %v688_v25  ;;  %v735_v25 = vld [vmem:[%s2426_s5 + $0xff0] sm:$0xff] }
 0x247   : > { %1856 = vst [vmem:[%s2538_s19 + $0xcf8] sm:$0xff] %v1344_v30  ;;  %v1391_v30 = vadd.f32 %v912_v59, %v687_v23  ;;  %v1373_v59 = vadd.f32 %v907_v28, %v669_v52  ;;  %v1374_v60 = vadd.f32 %v907_v28, %v670_v54  ;;  %v734_v23 = vld [vmem:[%s2426_s5 + $0xfe8] sm:$0xff]  ;;  %v716_v52 = vld [vmem:[%s2426_s5 + $0xf58] sm:$0xff]  ;;  %v717_v54 = vld [vmem:[%s2426_s5 + $0xf60] sm:$0xff] }
 0x248   : > { %1825 = vst [vmem:[%s2538_s19 + $0xc00] sm:$0xff] %v1313_v33  ;;  %v659_v33 = vld [vmem:[%s2426_s5 + $0xd90] sm:$0xff] }
 0x249   : > { %1826 = vst [vmem:[%s2538_s19 + $0xc08] sm:$0xff] %v1314_v35  ;;  %v1361_v35 = vadd.f32 %v907_v28, %v657_v29 }
 0x24a   : > { %1827 = vst [vmem:[%s2538_s19 + $0xc10] sm:$0xff] %v1315_v37  ;;  %v1362_v37 = vadd.f32 %v907_v28, %v658_v31  ;;  %v705_v31 = vld [vmem:[%s2426_s5 + $0xf00] sm:$0xff] }
 0x24b   : > { %1828 = vst [vmem:[%s2538_s19 + $0xc18] sm:$0xff] %v1316_v39  ;;  %v1363_v39 = vadd.f32 %v907_v28, %v659_v33  ;;  %v706_v33 = vld [vmem:[%s2426_s5 + $0xf08] sm:$0xff] }
 0x24c   : > { %1829 = vst [vmem:[%s2538_s19 + $0xc20] sm:$0xff] %v1317_v41  ;;  %v1364_v41 = vadd.f32 %v907_v28, %v660_v34 }
 0x24d   : > { %1830 = vst [vmem:[%s2538_s19 + $0xc28] sm:$0xff] %v1318_v43  ;;  %v1365_v43 = vadd.f32 %v907_v28, %v661_v36  ;;  %v708_v36 = vld [vmem:[%s2426_s5 + $0xf18] sm:$0xff] }
 0x24e   : > { %1831 = vst [vmem:[%s2538_s19 + $0xc30] sm:$0xff] %v1319_v45  ;;  %v1366_v45 = vadd.f32 %v907_v28, %v662_v38  ;;  %v709_v38 = vld [vmem:[%s2426_s5 + $0xf20] sm:$0xff] }
 0x24f   : > { %1832 = vst [vmem:[%s2538_s19 + $0xc38] sm:$0xff] %v1320_v47  ;;  %v1367_v47 = vadd.f32 %v907_v28, %v663_v40  ;;  %v710_v40 = vld [vmem:[%s2426_s5 + $0xf28] sm:$0xff] }
 0x250   : > { %1833 = vst [vmem:[%s2538_s19 + $0xc40] sm:$0xff] %v1321_v49  ;;  %v1368_v49 = vadd.f32 %v907_v28, %v664_v42  ;;  %v711_v42 = vld [vmem:[%s2426_s5 + $0xf30] sm:$0xff] }
 0x251   : > { %1834 = vst [vmem:[%s2538_s19 + $0xc48] sm:$0xff] %v1322_v51  ;;  %v1369_v51 = vadd.f32 %v907_v28, %v665_v44  ;;  %v712_v44 = vld [vmem:[%s2426_s5 + $0xf38] sm:$0xff] }
 0x252   : > { %1835 = vst [vmem:[%s2538_s19 + $0xc50] sm:$0xff] %v1323_v53  ;;  %v1370_v53 = vadd.f32 %v907_v28, %v666_v46  ;;  %v713_v46 = vld [vmem:[%s2426_s5 + $0xf40] sm:$0xff] }
 0x253   : > { %1836 = vst [vmem:[%s2538_s19 + $0xc58] sm:$0xff] %v1324_v55  ;;  %v1371_v55 = vadd.f32 %v907_v28, %v667_v48  ;;  %v714_v48 = vld [vmem:[%s2426_s5 + $0xf48] sm:$0xff] }
 0x254   : > { %1837 = vst [vmem:[%s2538_s19 + $0xc60] sm:$0xff] %v1325_v57  ;;  %v1372_v57 = vadd.f32 %v907_v28, %v668_v50  ;;  %v715_v50 = vld [vmem:[%s2426_s5 + $0xf50] sm:$0xff] }
 0x255   : > { %1838 = vst [vmem:[%s2538_s19 + $0xc68] sm:$0xff] %v1326_v58  ;;  %v672_v58 = vld [vmem:[%s2426_s5 + $0xdf8] sm:$0xff] }
 0x256   : > { %1839 = vst [vmem:[%s2538_s19 + $0xc70] sm:$0xff] %v1327_v61  ;;  %v927_v61 = vpop.permute.xlu1 %926  ;;  %v1376_v1 = vadd.f32 %v907_v28, %v672_v58  ;;  %v719_v58 = vld [vmem:[%s2426_s5 + $0xf70] sm:$0xff] }
 0x257   : > { %1840 = vst [vmem:[%s2538_s19 + $0xc78] sm:$0xff] %v1328_v63  ;;  %v1375_v63 = vadd.f32 %v907_v28, %v671_v56  ;;  %v1437_v28 = vadd.f32 %v927_v61, %v733_v21  ;;  %v1438_v29 = vadd.f32 %v927_v61, %v734_v23  ;;  %v718_v56 = vld [vmem:[%s2426_s5 + $0xf68] sm:$0xff] }
 0x258   : > { %1889 = vst [vmem:[%s2538_s19 + $0xe00] sm:$0xff] %v1377_v2  ;;  %v723_v2 = vld [vmem:[%s2426_s5 + $0xf90] sm:$0xff] }
 0x259   : > { %1890 = vst [vmem:[%s2538_s19 + $0xe08] sm:$0xff] %v1378_v4  ;;  %v1425_v4 = vadd.f32 %v927_v61, %v721_v62 }
 0x25a   : > { %1891 = vst [vmem:[%s2538_s19 + $0xe10] sm:$0xff] %v1379_v6  ;;  %v1426_v6 = vadd.f32 %v927_v61, %v722_v0 }
 0x25b   : > { %1892 = vst [vmem:[%s2538_s19 + $0xe18] sm:$0xff] %v1380_v8  ;;  %v1427_v8 = vadd.f32 %v927_v61, %v723_v2 }
 0x25c   : > { %1893 = vst [vmem:[%s2538_s19 + $0xe20] sm:$0xff] %v1381_v10  ;;  %v1428_v10 = vadd.f32 %v927_v61, %v724_v3 }
 0x25d   : > { %1894 = vst [vmem:[%s2538_s19 + $0xe28] sm:$0xff] %v1382_v12  ;;  %v1429_v12 = vadd.f32 %v927_v61, %v725_v5 }
 0x25e   : > { %1895 = vst [vmem:[%s2538_s19 + $0xe30] sm:$0xff] %v1383_v14  ;;  %v1430_v14 = vadd.f32 %v927_v61, %v726_v7 }
 0x25f   : > { %1896 = vst [vmem:[%s2538_s19 + $0xe38] sm:$0xff] %v1384_v16  ;;  %v1431_v16 = vadd.f32 %v927_v61, %v727_v9 }
 0x260   : > { %1897 = vst [vmem:[%s2538_s19 + $0xe40] sm:$0xff] %v1385_v18  ;;  %v1432_v18 = vadd.f32 %v927_v61, %v728_v11 }
 0x261   : > { %1898 = vst [vmem:[%s2538_s19 + $0xe48] sm:$0xff] %v1386_v20  ;;  %v1433_v20 = vadd.f32 %v927_v61, %v729_v13 }
 0x262   : > { %1899 = vst [vmem:[%s2538_s19 + $0xe50] sm:$0xff] %v1387_v22  ;;  %v1434_v22 = vadd.f32 %v927_v61, %v730_v15 }
 0x263   : > { %1900 = vst [vmem:[%s2538_s19 + $0xe58] sm:$0xff] %v1388_v24  ;;  %v1435_v24 = vadd.f32 %v927_v61, %v731_v17 }
 0x264   : > { %1901 = vst [vmem:[%s2538_s19 + $0xe60] sm:$0xff] %v1389_v26  ;;  %v1436_v26 = vadd.f32 %v927_v61, %v732_v19 }
 0x265   : > { %1902 = vst [vmem:[%s2538_s19 + $0xe68] sm:$0xff] %v1390_v27  ;;  %v736_v27 = vld [vmem:[%s2426_s5 + $0xff8] sm:$0xff] }
 0x266   : > { %1903 = vst [vmem:[%s2538_s19 + $0xe70] sm:$0xff] %v1391_v30  ;;  %v922_v30 = vpop.permute.xlu0 %921  ;;  %v1440_v34 = vadd.f32 %v927_v61, %v736_v27 }
 0x267   : > { %1904 = vst [vmem:[%s2538_s19 + $0xe78] sm:$0xff] %v1392_v32  ;;  %v1439_v32 = vadd.f32 %v927_v61, %v735_v25  ;;  %v1421_v61 = vadd.f32 %v922_v30, %v717_v54  ;;  %v1422_v62 = vadd.f32 %v922_v30, %v718_v56 }
 0x268   : > { %1873 = vst [vmem:[%s2538_s19 + $0xd80] sm:$0xff] %v1361_v35  ;;  %v707_v35 = vld [vmem:[%s2426_s5 + $0xf10] sm:$0xff] }
 0x269   : > { %1874 = vst [vmem:[%s2538_s19 + $0xd88] sm:$0xff] %v1362_v37  ;;  %v1409_v37 = vadd.f32 %v922_v30, %v705_v31 }
 0x26a   : > { %1875 = vst [vmem:[%s2538_s19 + $0xd90] sm:$0xff] %v1363_v39  ;;  %v1410_v39 = vadd.f32 %v922_v30, %v706_v33 }
 0x26b   : > { %1876 = vst [vmem:[%s2538_s19 + $0xd98] sm:$0xff] %v1364_v41  ;;  %v1411_v41 = vadd.f32 %v922_v30, %v707_v35 }
 0x26c   : > { %1877 = vst [vmem:[%s2538_s19 + $0xda0] sm:$0xff] %v1365_v43  ;;  %v1412_v43 = vadd.f32 %v922_v30, %v708_v36 }
 0x26d   : > { %1878 = vst [vmem:[%s2538_s19 + $0xda8] sm:$0xff] %v1366_v45  ;;  %v1413_v45 = vadd.f32 %v922_v30, %v709_v38 }
 0x26e   : > { %1879 = vst [vmem:[%s2538_s19 + $0xdb0] sm:$0xff] %v1367_v47  ;;  %v1414_v47 = vadd.f32 %v922_v30, %v710_v40 }
 0x26f   : > { %1880 = vst [vmem:[%s2538_s19 + $0xdb8] sm:$0xff] %v1368_v49  ;;  %v1415_v49 = vadd.f32 %v922_v30, %v711_v42 }
 0x270   : > { %1881 = vst [vmem:[%s2538_s19 + $0xdc0] sm:$0xff] %v1369_v51  ;;  %v1416_v51 = vadd.f32 %v922_v30, %v712_v44 }
 0x271   : > { %1882 = vst [vmem:[%s2538_s19 + $0xdc8] sm:$0xff] %v1370_v53  ;;  %v1417_v53 = vadd.f32 %v922_v30, %v713_v46 }
 0x272   : > { %1883 = vst [vmem:[%s2538_s19 + $0xdd0] sm:$0xff] %v1371_v55  ;;  %v1418_v55 = vadd.f32 %v922_v30, %v714_v48 }
 0x273   : > { %1884 = vst [vmem:[%s2538_s19 + $0xdd8] sm:$0xff] %v1372_v57  ;;  %v1419_v57 = vadd.f32 %v922_v30, %v715_v50 }
 0x274   : > { %1885 = vst [vmem:[%s2538_s19 + $0xde0] sm:$0xff] %v1373_v59  ;;  %v1420_v59 = vadd.f32 %v922_v30, %v716_v52 }
 0x275   : > { %1886 = vst [vmem:[%s2538_s19 + $0xde8] sm:$0xff] %v1374_v60  ;;  %v720_v60 = vld [vmem:[%s2426_s5 + $0xf78] sm:$0xff]  ;;  %s1963_s5 = ssub.s32 (%p2380_p9), 18, %s2099_s24 }
 0x276   : > { %1887 = vst [vmem:[%s2538_s19 + $0xdf0] sm:$0xff] %v1375_v63  ;;  %v1423_v63 = vadd.f32 %v922_v30, %v719_v58  ;;  %v1424_v0 = vadd.f32 %v922_v30, %v720_v60  ;;  %p1964_p8 = scmp.lt.s32.totalorder (%p2380_p9), %s1963_s5, 16 }
 0x277   : > { %1888 = vst [vmem:[%s2538_s19 + $0xdf8] sm:$0xff] %v1376_v1 }
 0x278   : > { %1937 = vst [vmem:[%s2538_s19 + $0xf80] sm:$0xff] %v1425_v4 }
 0x279   : > { %1938 = vst [vmem:[%s2538_s19 + $0xf88] sm:$0xff] %v1426_v6 }
 0x27a   : > { %1939 = vst [vmem:[%s2538_s19 + $0xf90] sm:$0xff] %v1427_v8 }
 0x27b   : > { %1940 = vst [vmem:[%s2538_s19 + $0xf98] sm:$0xff] %v1428_v10 }
 0x27c   : > { %1941 = vst [vmem:[%s2538_s19 + $0xfa0] sm:$0xff] %v1429_v12 }
 0x27d   : > { %1942 = vst [vmem:[%s2538_s19 + $0xfa8] sm:$0xff] %v1430_v14 }
 0x27e   : > { %1943 = vst [vmem:[%s2538_s19 + $0xfb0] sm:$0xff] %v1431_v16 }
 0x27f   : > { %1944 = vst [vmem:[%s2538_s19 + $0xfb8] sm:$0xff] %v1432_v18 }
 0x280   : > { %1945 = vst [vmem:[%s2538_s19 + $0xfc0] sm:$0xff] %v1433_v20 }
 0x281   : > { %1946 = vst [vmem:[%s2538_s19 + $0xfc8] sm:$0xff] %v1434_v22 }
 0x282   : > { %1947 = vst [vmem:[%s2538_s19 + $0xfd0] sm:$0xff] %v1435_v24 }
 0x283   : > { %1948 = vst [vmem:[%s2538_s19 + $0xfd8] sm:$0xff] %v1436_v26 }
 0x284   : > { %1949 = vst [vmem:[%s2538_s19 + $0xfe0] sm:$0xff] %v1437_v28 }
 0x285   : > { %1950 = vst [vmem:[%s2538_s19 + $0xfe8] sm:$0xff] %v1438_v29 }
 0x286   : > { %1951 = vst [vmem:[%s2538_s19 + $0xff0] sm:$0xff] %v1439_v32 }
 0x287   : > { %1952 = vst [vmem:[%s2538_s19 + $0xff8] sm:$0xff] %v1440_v34 }
 0x288   : > { %1921 = vst [vmem:[%s2538_s19 + $0xf00] sm:$0xff] %v1409_v37 }
 0x289   : > { %1922 = vst [vmem:[%s2538_s19 + $0xf08] sm:$0xff] %v1410_v39 }
 0x28a   : > { %1923 = vst [vmem:[%s2538_s19 + $0xf10] sm:$0xff] %v1411_v41 }
 0x28b   : > { %1924 = vst [vmem:[%s2538_s19 + $0xf18] sm:$0xff] %v1412_v43 }
 0x28c   : > { %1925 = vst [vmem:[%s2538_s19 + $0xf20] sm:$0xff] %v1413_v45 }
 0x28d   : > { %1926 = vst [vmem:[%s2538_s19 + $0xf28] sm:$0xff] %v1414_v47 }
 0x28e   : > { %1927 = vst [vmem:[%s2538_s19 + $0xf30] sm:$0xff] %v1415_v49 }
 0x28f   : > { %1928 = vst [vmem:[%s2538_s19 + $0xf38] sm:$0xff] %v1416_v51 }
 0x290   : > { %1929 = vst [vmem:[%s2538_s19 + $0xf40] sm:$0xff] %v1417_v53 }
 0x291   : > { %1930 = vst [vmem:[%s2538_s19 + $0xf48] sm:$0xff] %v1418_v55 }
 0x292   : > { %1931 = vst [vmem:[%s2538_s19 + $0xf50] sm:$0xff] %v1419_v57 }
 0x293   : > { %1932 = vst [vmem:[%s2538_s19 + $0xf58] sm:$0xff] %v1420_v59  ;;  %1960 = sbr.rel (!%p2380_p9) target bundleno = 696 (0x2b8), region = 36 }
 0x294   : > { %1933 = vst [vmem:[%s2538_s19 + $0xf60] sm:$0xff] %v1421_v61 }
 0x295   : > { %1934 = vst [vmem:[%s2538_s19 + $0xf68] sm:$0xff] %v1422_v62 }
 0x296   : > { %1935 = vst [vmem:[%s2538_s19 + $0xf70] sm:$0xff] %v1423_v63 }
 0x297   : > { %1936 = vst [vmem:[%s2538_s19 + $0xf78] sm:$0xff] %v1424_v0 }
 0x298   : > { %s3645_s5 = smov (!%p1964_p8, %s1963_s5), 16 }
 0x299   : > { %s2100_s20 = sshll.u32 %s3645_s5, 8 }
 0x29a   : > { %s1967_s25 = ssub.s32 4096, %s2100_s20 }
 0x29b   : > { %s1968_s26 = sshll.u32 %s1967_s25, 4 }
 0x29c   : > { %1969 = vsyncadd %s1954_s7, %s1968_s26  ;;  %p3565_p13 = scmp.ne.s32.totalorder %s2100_s20, 0  ;;  %s2111_s29 = sshll.u32 %s2301_s12, 7 }
 0x29d   : > { %s1974_s6 = scalar_lea.hbm %s3629_s2, %s2111_s29  ;;  %s2103_s4 = sshll.u32 %s3645_s5, 3 }
 0x29e   : > { %s1977_s8 = sshll.u32 %s2538_s19, 4  ;;  %s1979_s3 = sshll.u32 %s1974_s6, 4  ;;  %s3575_s8 = int_to_ptr.vmem [resolvable:$true] %s1977_s8  ;;  %s3577_s3 = int_to_ptr.hbm [resolvable:$true] %s1979_s3 }
 0x29f   : > { %s2113_s15 = sshll.u32 %s3645_s5, 12  ;;  %s2216_s16 = sshra.s32 %s3575_s8, 4  ;;  %s2217_s16 = int_to_ptr.vmem [resolvable:$true] %s2216_s16 }
 0x2a0   : > { %s2218_s18 = sshrl.u32 %s2113_s15, 4  ;;  %s2315_s12 = smov [#allocation5]  }
 0x2a1   : > { %s2223_s24 = scalar_lea.vmem %s2217_s16, %s2218_s18  ;;  %s2227_s20 = scalar_lea.vmem %s2315_s12, 8192 }
 0x2a2   : > { %p2224_p9 = scmp.ne.s32.totalorder %s2217_s16, %s2223_s24  ;;  %p2229_p2 = scmp.lt.s32.totalorder %s2227_s20, %s2223_s24 }
 0x2a4   : > { %p2225_p0 = pnand %p2224_p9, %p3565_p13 }
 0x2a6   : > { %p2226_p1 = pneg %p2225_p0 }
 0x2a8   : > { %p2231_p3 = pnand %p2229_p2, %p2226_p1 }
 0x2aa   : > { %2234 = shalt.err (!%p2231_p3)
}
 0x2ab   : > { %s2235_s19 = sshra.s32 %s3577_s3, 4  ;;  %s2246_s28 = scalar_lea.hbm %s3629_s2, 4608  ;;  %s2236_s19 = int_to_ptr.hbm [resolvable:$true] %s2235_s19 }
 0x2ac   : > { %s2242_s25 = scalar_lea.hbm %s2236_s19, %s2218_s18  ;;  %p2247_p7 = scmp.lt.s32.totalorder %s2236_s19, %s3629_s2 }
 0x2ad   : > { %p2243_p4 = scmp.ne.s32.totalorder %s2236_s19, %s2242_s25  ;;  %p2248_p10 = scmp.lt.s32.totalorder %s2246_s28, %s2242_s25 }
 0x2af   : > { %p2244_p5 = pnand %p2243_p4, %p3565_p13  ;;  %p2249_p8 = por %p2248_p10, %p2247_p7 }
 0x2b1   : > { %p2245_p6 = pneg %p2244_p5 }
 0x2b3   : > { %p2250_p9 = pnand %p2249_p8, %p2245_p6 }
 0x2b5   : > { %2253 = shalt.err (!%p2250_p9)
}
 0x2b6   : > { %s2316_s16 = smov 2048   ;;  %s2317_s18 = smov 2304  }
 0x2b7   : > { %1985 = dma.vmem_to_hbm [thread:$0]  (%p3565_p13), %s3575_s8, %s2113_s15, %s3577_s3, %s1954_s7, %s2316_s16, %s2317_s18, %s2103_s4  }
 0x2b8 PF: > { %s1994_s24 = sand.u32 1, %s2289_s9   ;;  %p2117_p0 = pnand %p2086_p12, %p2387_p11 }
 0x2b9   : > { %s1995_s12 = scalar_lea.sflag [#allocation4], %s1994_s24 }
 0x2ba   : > { %p2118_p1 = pneg %p2117_p0 }
 0x2bc   : > { %2284 = dma.done.wait (%p2118_p1), %s1995_s12, 65536  }
 0x2bd   : > { %2286 = vsyncadd (%p2118_p1), %s1995_s12, 4294901760  ;;  %s18_s14 = sadd.s32 1, %s2309_s14   ;;  %s3635_s9 = smov %s2293_s10 }
 0x2be   : > { %p15_p2 = scmp.ge.s32.totalorder %s18_s14, 4   ;;  %s3636_s10 = smov %s2297_s11 }
 0x2bf   : > { %s3637_s11 = smov %s2385_s22  ;;  %s3638_s12 = smov %s2305_s13 }
 0x2c0   : > { %s3639_s13 = smov %s3641_s17  ;;  %17 = sbr.rel (!%p15_p2) target bundleno = 6 (0x6), region = 76 }
 0x2c5   :  { %2001 = vsyncpa [#allocation3], 1 }
 0x2c6   :  { %2003 = vsyncpa [#allocation3 + $0x1], 1 }
 0x2c7   :  { %2004 = vsyncpa [#allocation4], 1 }
 0x2c8   :  { %2006 = vsyncpa [#allocation4 + $0x1], 1 }

</bundles_post_ra>
